<compile_context>
chip_gen: v7x
topology: tpu7x:2x2x1
jax: 0.10.0
libtpu: 0.0.40
codegen_flags: <defaults>
</compile_context>

<pallas_src>
import math
import functools

import numpy as np
import jax
import jax.numpy as jnp
from jax.experimental import pallas as pl
from jax.experimental.pallas import tpu as pltpu


# ----------------------------------------------------------------------------
# Config
# ----------------------------------------------------------------------------

CONFIG = dict(
    vocab_size=30,        # prot_bert vocab is 30; kept tiny here
    hidden=32,
    heads=2,
    head_dim=16,
    intermediate=64,
    layers=2,
    max_pos=64,
    num_classes=5,
    seq=8,
)

_LANE = 128
_H = CONFIG["hidden"]
_I = CONFIG["intermediate"]
_S = CONFIG["seq"]
_L = CONFIG["layers"]
_HEADS = CONFIG["heads"]
_D = CONFIG["head_dim"]
_C = CONFIG["num_classes"]
_V = CONFIG["vocab_size"]
_VPAD = 32                         # vocab rows padded to a multiple of 8

# ---- packed-parameter blob row map (single lane-dense (ROWS,128) f32 DMA) ---
_WORD0 = 0                         # word embedding table (VPAD, :H)
_POS0 = _WORD0 + _VPAD             # positional embeddings (S, :H)
_MISC0 = _POS0 + _S                # type emb / embedding-LN rows (8-row block)
_TYPE_ROW = _MISC0 + 0
_EMB_G_ROW = _MISC0 + 1
_EMB_B_ROW = _MISC0 + 2
_LAYER0 = _MISC0 + 8               # first layer base (8-aligned)
_LAYER_STRIDE = 2 * _H + 8         # 72 rows per layer
# per-layer row offsets (relative to layer base)
_R_WQKVO = 0                       # (H,128): lanes[0:96]=[wq|wk|wv], [96:128]=wo
_R_WIWF = _H                       # (H,128): lanes[0:64]=wi, [64:128]=wf^T
_R_BQKV = 2 * _H + 0
_R_BO = 2 * _H + 1
_R_G1 = 2 * _H + 2
_R_B1 = 2 * _H + 3
_R_BI = 2 * _H + 4
_R_BF = 2 * _H + 5
_R_G2 = 2 * _H + 6
_R_B2 = 2 * _H + 7
_CLS0 = _LAYER0 + _L * _LAYER_STRIDE   # classifier weight (H,128)
_CLSB0 = _CLS0 + _H                    # classifier bias row (+7 pad rows)
_TOTAL_ROWS = _CLSB0 + 8               # 232


# ----------------------------------------------------------------------------
# Fused Pallas kernel: in-kernel embedding -> all layers -> classifier softmax
# ----------------------------------------------------------------------------

def _fused_encoder_kernel(ids_ref, blob_ref, probs_ref, attn_ref, ctx_ref):
    scale = 1.0 / math.sqrt(_D)

    def row(r):                                   # one bias/LN row, (1, 128)
        return blob_ref[r:r + 1, :]

    def layer_norm(x, g_row, b_row):
        g = row(g_row)[:, :_H]
        b = row(b_row)[:, :_H]
        mu = jnp.mean(x, axis=-1, keepdims=True)
        var = jnp.mean(jnp.square(x - mu), axis=-1, keepdims=True)
        return (x - mu) * jax.lax.rsqrt(var + 1e-12) * g + b

    # ---- embeddings: in-kernel gather as one-hot MXU matmul ----
    ids = ids_ref[...]                                              # (S, 1) i32
    vocab_iota = jax.lax.broadcasted_iota(jnp.int32, (_S, _VPAD), 1)
    onehot = jnp.where(vocab_iota == ids, 1.0, 0.0).astype(jnp.float32)
    word = jnp.dot(onehot, blob_ref[_WORD0:_WORD0 + _VPAD, :_H],
                   preferred_element_type=jnp.float32)              # (S, H)
    h = word + blob_ref[_POS0:_POS0 + _S, :_H] + row(_TYPE_ROW)[:, :_H]
    h = layer_norm(h, _EMB_G_ROW, _EMB_B_ROW)

    lane_pad = jnp.zeros((_S, _LANE - _S), jnp.float32)   # hoisted, reused

    # ---- transformer layers (static unroll; L tiny) ----
    for l in range(_L):
        base = _LAYER0 + l * _LAYER_STRIDE
        wslab = blob_ref[base + _R_WQKVO:base + _R_WQKVO + _H, :]   # (H, 128)
        # one MXU pass: lanes [0:96] = q|k|v projections, [96:128] = h@wo (junk)
        qkv = (jnp.dot(h, wslab, preferred_element_type=jnp.float32)
               + row(base + _R_BQKV))                               # (S, 128)

        for hh in range(_HEADS):
            q = qkv[:, hh * _D:(hh + 1) * _D]
            k = qkv[:, _H + hh * _D:_H + (hh + 1) * _D]
            v = qkv[:, 2 * _H + hh * _D:2 * _H + (hh + 1) * _D]
            scores = jax.lax.dot_general(
                q, k, (((1,), (1,)), ((), ())),
                preferred_element_type=jnp.float32) * scale         # (S, S)
            m = jnp.max(scores, axis=-1, keepdims=True)
            e = jnp.exp(scores - m)
            # exact division: returned attention probs stay numerically faithful
            p = e / jnp.sum(e, axis=-1, keepdims=True)
            r0 = (l * _HEADS + hh) * _S
            # lane-dense (S,128) store: no masked vst / narrow HBM writeback
            attn_ref[r0:r0 + _S, :] = jnp.concatenate([p, lane_pad], axis=-1)
            # per-head context into VMEM scratch (no value-level lane concat)
            ctx_ref[:, hh * _D:(hh + 1) * _D] = jnp.dot(
                p, v, preferred_element_type=jnp.float32)

        wo = wslab[:, 3 * _H:]                                       # (H, H)
        attn_out = (jnp.dot(ctx_ref[...], wo, preferred_element_type=jnp.float32)
                    + row(base + _R_BO)[:, :_H])
        h = layer_norm(h + attn_out, base + _R_G1, base + _R_B1)

        wiwf = blob_ref[base + _R_WIWF:base + _R_WIWF + _H, :]       # (H, 128)
        ff = (jnp.dot(h, wiwf[:, :_I], preferred_element_type=jnp.float32)
              + row(base + _R_BI)[:, :_I])
        # TODO(synk): HF BERT uses exact (erf) GELU; tanh approximation here.
        ff = jax.nn.gelu(ff, approximate=True)
        # down-projection against stored wf^T: contract last dims, no transpose
        ff = (jax.lax.dot_general(ff, wiwf[:, _I:], (((1,), (1,)), ((), ())),
                                  preferred_element_type=jnp.float32)
              + row(base + _R_BF)[:, :_H])
        h = layer_norm(h + ff, base + _R_G2, base + _R_B2)

    # ---- CLS -> classifier -> softmax (padded logits carry -1e30 bias) ----
    cls = h[0:1, :]
    logits = (jnp.dot(cls, blob_ref[_CLS0:_CLS0 + _H, :],
                      preferred_element_type=jnp.float32) + row(_CLSB0))
    m = jnp.max(logits, axis=-1, keepdims=True)
    e = jnp.exp(logits - m)
    probs_ref[...] = e * pl.reciprocal(jnp.sum(e, axis=-1, keepdims=True),
                                       approx=True)


# ----------------------------------------------------------------------------
# Parameter init (deterministic) + packing into the single lane-dense blob
# ----------------------------------------------------------------------------

def init_params(key):
    c = CONFIG
    H = c["hidden"]

    def nrm(k, shape, scale=0.02):
        return scale * jax.random.normal(k, shape, dtype=jnp.float32)

    keys = iter(jax.random.split(key, 8 + c["layers"] * 16))
    params = {
        "word_emb": nrm(next(keys), (c["vocab_size"], H)),
        "pos_emb": nrm(next(keys), (c["max_pos"], H)),
        "type_emb": nrm(next(keys), (2, H)),
        "emb_ln_g": jnp.ones((H,), jnp.float32),
        "emb_ln_b": jnp.zeros((H,), jnp.float32),
        "cls_w": nrm(next(keys), (H, c["num_classes"])),
        "cls_b": jnp.zeros((c["num_classes"],), jnp.float32),
        "layers": [],
    }
    for _ in range(c["layers"]):
        lyr = {
            "wq": nrm(next(keys), (H, H)), "bq": jnp.zeros((H,), jnp.float32),
            "wk": nrm(next(keys), (H, H)), "bk": jnp.zeros((H,), jnp.float32),
            "wv": nrm(next(keys), (H, H)), "bv": jnp.zeros((H,), jnp.float32),
            "wo": nrm(next(keys), (H, H)), "bo": jnp.zeros((H,), jnp.float32),
            "ln1_g": jnp.ones((H,), jnp.float32),
            "ln1_b": jnp.zeros((H,), jnp.float32),
            "wi": nrm(next(keys), (H, c["intermediate"])),
            "bi": jnp.zeros((c["intermediate"],), jnp.float32),
            "wf": nrm(next(keys), (c["intermediate"], H)),
            "bf": jnp.zeros((H,), jnp.float32),
            "ln2_g": jnp.ones((H,), jnp.float32),
            "ln2_b": jnp.zeros((H,), jnp.float32),
        }
        params["layers"].append(lyr)
    return params


def pack_params(params):
    """Pack everything into one lane-dense (TOTAL_ROWS, 128) f32 blob."""
    blob = np.zeros((_TOTAL_ROWS, _LANE), np.float32)
    blob[_WORD0:_WORD0 + _V, :_H] = np.asarray(params["word_emb"])
    blob[_POS0:_POS0 + _S, :_H] = np.asarray(params["pos_emb"][:_S])
    blob[_TYPE_ROW, :_H] = np.asarray(params["type_emb"][0])
    blob[_EMB_G_ROW, :_H] = np.asarray(params["emb_ln_g"])
    blob[_EMB_B_ROW, :_H] = np.asarray(params["emb_ln_b"])
    for l, lyr in enumerate(params["layers"]):
        base = _LAYER0 + l * _LAYER_STRIDE
        blob[base:base + _H, 0:3 * _H] = np.concatenate(
            [np.asarray(lyr["wq"]), np.asarray(lyr["wk"]),
             np.asarray(lyr["wv"])], axis=1)
        blob[base:base + _H, 3 * _H:] = np.asarray(lyr["wo"])
        blob[base + _H:base + 2 * _H, :_I] = np.asarray(lyr["wi"])
        blob[base + _H:base + 2 * _H, _I:] = np.asarray(lyr["wf"]).T
        blob[base + _R_BQKV, 0:3 * _H] = np.concatenate(
            [np.asarray(lyr["bq"]), np.asarray(lyr["bk"]),
             np.asarray(lyr["bv"])])
        blob[base + _R_BO, :_H] = np.asarray(lyr["bo"])
        blob[base + _R_G1, :_H] = np.asarray(lyr["ln1_g"])
        blob[base + _R_B1, :_H] = np.asarray(lyr["ln1_b"])
        blob[base + _R_BI, :_I] = np.asarray(lyr["bi"])
        blob[base + _R_BF, :_H] = np.asarray(lyr["bf"])
        blob[base + _R_G2, :_H] = np.asarray(lyr["ln2_g"])
        blob[base + _R_B2, :_H] = np.asarray(lyr["ln2_b"])
    blob[_CLS0:_CLS0 + _H, :_C] = np.asarray(params["cls_w"])
    blob[_CLSB0, :_C] = np.asarray(params["cls_b"])
    blob[_CLSB0, _C:] = -1e30        # padded logits -> exactly 0 probability
    return jnp.asarray(blob)


# ----------------------------------------------------------------------------
# Forward pass (mirrors SubstrateClassifier3.forward)
# ----------------------------------------------------------------------------

def substrate_classifier_forward(blob, input_ids):
    """input_ids: [1, S] int32. Returns (probs [1, num_classes], attentions)."""
    # TODO(synk): no attention mask is applied (fixed-length synthetic input).
    ids_col = input_ids[0].astype(jnp.int32).reshape(_S, 1)

    vmem = pl.BlockSpec(memory_space=pltpu.MemorySpace.VMEM)
    probs_pad, attn_slab = pl.pallas_call(
        _fused_encoder_kernel,
        out_shape=(
            jax.ShapeDtypeStruct((1, _LANE), jnp.float32),             # probs
            jax.ShapeDtypeStruct((_L * _HEADS * _S, _LANE), jnp.float32),
        ),
        in_specs=[vmem, vmem],
        out_specs=(vmem, vmem),
        scratch_shapes=[pltpu.VMEM((_S, _H), jnp.float32)],            # ctx
    )(ids_col, blob)

    probs = probs_pad[:, :_C]                                          # (1, C)
    attn = attn_slab[:, :_S].reshape(_L, _HEADS, _S, _S)
    attentions = tuple(attn[l][None] for l in range(_L))               # (1,H,S,S)
    return probs, attentions


# ----------------------------------------------------------------------------
# main
# ----------------------------------------------------------------------------

if __name__ == "__main__":
    key = jax.random.PRNGKey(0)
    pkey, ikey = jax.random.split(key)
    blob = pack_params(init_params(pkey))

    # synthetic "tokenized" input (batch=1, seq=8), as the tokenizer would emit
    input_ids = jax.random.randint(ikey, (1, _S), 0, CONFIG["vocab_size"],
                                   dtype=jnp.int32)

    fwd = jax.jit(substrate_classifier_forward)
    probs, attentions = fwd(blob, input_ids)
    jax.block_until_ready((probs, attentions))

    assert probs.shape == (1, CONFIG["num_classes"])
    assert len(attentions) == CONFIG["layers"]
    assert attentions[0].shape == (1, CONFIG["heads"], _S, _S)
    # classifier softmax uses EUP approx reciprocal -> allow small slack
    assert abs(float(jnp.sum(probs)) - 1.0) < 5e-3
    # attention rows use exact division -> tight softmax check
    assert abs(float(jnp.sum(attentions[0][0, 0, 0])) - 1.0) < 1e-4

    print("KERNEL_OK")
</pallas_src>

<mosaic_0001>
module attributes {stable_mosaic.version = 11 : i64} {
  func.func @_fused_encoder_kernel(%arg0: memref<8x1xi32, #tpu.memory_space<vmem>>, %arg1: memref<232x128xf32, #tpu.memory_space<vmem>>, %arg2: memref<1x128xf32, #tpu.memory_space<vmem>>, %arg3: memref<32x128xf32, #tpu.memory_space<vmem>>, %arg4: memref<8x32xf32, #tpu.memory_space<vmem>>) attributes {dimension_semantics = [], scalar_prefetch = 0 : i64, scratch_operands = 1 : i64, tpu.core_type = #tpu.core_type<tc>} {
    %c0 = arith.constant 0 : index
    %c0_0 = arith.constant 0 : index
    %0 = vector.load %arg0[%c0, %c0_0] : memref<8x1xi32, #tpu.memory_space<vmem>>, vector<8x1xi32>
    %1 = tpu.iota {dimensions = array<i32: 1>} : vector<8x32xi32>
    %2 = vector.broadcast %0 : vector<8x1xi32> to vector<8x32xi32>
    %3 = arith.cmpi eq, %1, %2 : vector<8x32xi32>
    %cst = arith.constant 1.000000e+00 : f32
    %cst_1 = arith.constant 0.000000e+00 : f32
    %4 = vector.broadcast %cst : f32 to vector<8x32xf32>
    %5 = vector.broadcast %cst_1 : f32 to vector<8x32xf32>
    %6 = arith.select %3, %4, %5 : vector<8x32xi1>, vector<8x32xf32>
    %c0_2 = arith.constant 0 : index
    %c0_3 = arith.constant 0 : index
    %7 = vector.load %arg1[%c0_2, %c0_3] : memref<232x128xf32, #tpu.memory_space<vmem>>, vector<32x32xf32>
    %cst_4 = arith.constant dense<0.000000e+00> : vector<8x32xf32>
    %8 = tpu.matmul %6, %7, %cst_4 {dimension_numbers = #tpu.dot_dimension_numbers<[1], [0], [0], [1], [0, 0, 1, 1], [], []>} : vector<8x32xf32>, vector<32x32xf32>, vector<8x32xf32> -> vector<8x32xf32>
    %c32 = arith.constant 32 : index
    %c0_5 = arith.constant 0 : index
    %9 = vector.load %arg1[%c32, %c0_5] : memref<232x128xf32, #tpu.memory_space<vmem>>, vector<8x32xf32>
    %10 = arith.addf %8, %9 : vector<8x32xf32>
    %c40 = arith.constant 40 : index
    %c0_6 = arith.constant 0 : index
    %11 = vector.load %arg1[%c40, %c0_6] : memref<232x128xf32, #tpu.memory_space<vmem>>, vector<1x128xf32>
    %12 = vector.extract_strided_slice %11 {offsets = [0, 0], sizes = [1, 32], strides = [1, 1]} : vector<1x128xf32> to vector<1x32xf32>
    %13 = vector.broadcast %12 : vector<1x32xf32> to vector<8x32xf32>
    %14 = arith.addf %10, %13 : vector<8x32xf32>
    %c41 = arith.constant 41 : index
    %c0_7 = arith.constant 0 : index
    %15 = vector.load %arg1[%c41, %c0_7] : memref<232x128xf32, #tpu.memory_space<vmem>>, vector<1x128xf32>
    %16 = vector.extract_strided_slice %15 {offsets = [0, 0], sizes = [1, 32], strides = [1, 1]} : vector<1x128xf32> to vector<1x32xf32>
    %c42 = arith.constant 42 : index
    %c0_8 = arith.constant 0 : index
    %17 = vector.load %arg1[%c42, %c0_8] : memref<232x128xf32, #tpu.memory_space<vmem>>, vector<1x128xf32>
    %18 = vector.extract_strided_slice %17 {offsets = [0, 0], sizes = [1, 32], strides = [1, 1]} : vector<1x128xf32> to vector<1x32xf32>
    %cst_9 = arith.constant dense<0.000000e+00> : vector<8xf32>
    %19 = vector.multi_reduction <add>, %14, %cst_9 [1] : vector<8x32xf32> to vector<8xf32>
    %20 = vector.shape_cast %19 : vector<8xf32> to vector<8x1xf32>
    %cst_10 = arith.constant 3.200000e+01 : f32
    %21 = vector.broadcast %cst_10 : f32 to vector<8x1xf32>
    %22 = arith.divf %20, %21 : vector<8x1xf32>
    %23 = vector.broadcast %22 : vector<8x1xf32> to vector<8x32xf32>
    %24 = arith.subf %14, %23 : vector<8x32xf32>
    %25 = arith.mulf %24, %24 : vector<8x32xf32>
    %cst_11 = arith.constant dense<0.000000e+00> : vector<8xf32>
    %26 = vector.multi_reduction <add>, %25, %cst_11 [1] : vector<8x32xf32> to vector<8xf32>
    %27 = vector.shape_cast %26 : vector<8xf32> to vector<8x1xf32>
    %cst_12 = arith.constant 3.200000e+01 : f32
    %28 = vector.broadcast %cst_12 : f32 to vector<8x1xf32>
    %29 = arith.divf %27, %28 : vector<8x1xf32>
    %30 = vector.broadcast %22 : vector<8x1xf32> to vector<8x32xf32>
    %31 = arith.subf %14, %30 : vector<8x32xf32>
    %cst_13 = arith.constant 9.99999996E-13 : f32
    %32 = vector.broadcast %cst_13 : f32 to vector<8x1xf32>
    %33 = arith.addf %29, %32 : vector<8x1xf32>
    %34 = math.rsqrt %33 : vector<8x1xf32>
    %35 = vector.broadcast %34 : vector<8x1xf32> to vector<8x32xf32>
    %36 = arith.mulf %31, %35 : vector<8x32xf32>
    %37 = vector.broadcast %16 : vector<1x32xf32> to vector<8x32xf32>
    %38 = arith.mulf %36, %37 : vector<8x32xf32>
    %39 = vector.broadcast %18 : vector<1x32xf32> to vector<8x32xf32>
    %40 = arith.addf %38, %39 : vector<8x32xf32>
    %cst_14 = arith.constant 0.000000e+00 : f32
    %41 = vector.broadcast %cst_14 : f32 to vector<8x120xf32>
    %c48 = arith.constant 48 : index
    %c0_15 = arith.constant 0 : index
    %42 = vector.load %arg1[%c48, %c0_15] : memref<232x128xf32, #tpu.memory_space<vmem>>, vector<32x128xf32>
    %cst_16 = arith.constant dense<0.000000e+00> : vector<8x128xf32>
    %43 = tpu.matmul %40, %42, %cst_16 {dimension_numbers = #tpu.dot_dimension_numbers<[1], [0], [0], [1], [0, 0, 1, 1], [], []>} : vector<8x32xf32>, vector<32x128xf32>, vector<8x128xf32> -> vector<8x128xf32>
    %c112 = arith.constant 112 : index
    %c0_17 = arith.constant 0 : index
    %44 = vector.load %arg1[%c112, %c0_17] : memref<232x128xf32, #tpu.memory_space<vmem>>, vector<1x128xf32>
    %45 = vector.broadcast %44 : vector<1x128xf32> to vector<8x128xf32>
    %46 = arith.addf %43, %45 : vector<8x128xf32>
    %47 = vector.extract_strided_slice %46 {offsets = [0, 0], sizes = [8, 16], strides = [1, 1]} : vector<8x128xf32> to vector<8x16xf32>
    %48 = vector.extract_strided_slice %46 {offsets = [0, 32], sizes = [8, 16], strides = [1, 1]} : vector<8x128xf32> to vector<8x16xf32>
    %49 = vector.extract_strided_slice %46 {offsets = [0, 64], sizes = [8, 16], strides = [1, 1]} : vector<8x128xf32> to vector<8x16xf32>
    %cst_18 = arith.constant dense<0.000000e+00> : vector<8x8xf32>
    %50 = tpu.matmul %47, %48, %cst_18 {dimension_numbers = #tpu.dot_dimension_numbers<[1], [1], [0], [0], [0, 0, 1, 0], [], []>} : vector<8x16xf32>, vector<8x16xf32>, vector<8x8xf32> -> vector<8x8xf32>
    %cst_19 = arith.constant 2.500000e-01 : f32
    %51 = vector.broadcast %cst_19 : f32 to vector<8x8xf32>
    %52 = arith.mulf %50, %51 : vector<8x8xf32>
    %cst_20 = arith.constant dense<0xFF800000> : vector<8xf32>
    %53 = vector.multi_reduction <maximumf>, %52, %cst_20 [1] : vector<8x8xf32> to vector<8xf32>
    %54 = vector.shape_cast %53 : vector<8xf32> to vector<8x1xf32>
    %55 = vector.broadcast %54 : vector<8x1xf32> to vector<8x8xf32>
    %56 = arith.subf %52, %55 : vector<8x8xf32>
    %57 = math.exp %56 : vector<8x8xf32>
    %cst_21 = arith.constant dense<0.000000e+00> : vector<8xf32>
    %58 = vector.multi_reduction <add>, %57, %cst_21 [1] : vector<8x8xf32> to vector<8xf32>
    %59 = vector.shape_cast %58 : vector<8xf32> to vector<8x1xf32>
    %60 = vector.broadcast %59 : vector<8x1xf32> to vector<8x8xf32>
    %61 = arith.divf %57, %60 : vector<8x8xf32>
    %62 = tpu.concatenate %61, %41 in 1 : vector<8x8xf32>, vector<8x120xf32> -> vector<8x128xf32>
    %c0_22 = arith.constant 0 : index
    %c0_23 = arith.constant 0 : index
    %63 = vector.load %arg3[%c0_22, %c0_23] : memref<32x128xf32, #tpu.memory_space<vmem>>, vector<8x128xf32>
    tpu.vector_store %arg3[%c0_22, %c0_23], %62 {strides = array<i32>} : memref<32x128xf32, #tpu.memory_space<vmem>>, vector<8x128xf32>,
    %cst_24 = arith.constant dense<0.000000e+00> : vector<8x16xf32>
    %64 = tpu.matmul %61, %49, %cst_24 {dimension_numbers = #tpu.dot_dimension_numbers<[1], [0], [0], [1], [0, 0, 1, 1], [], []>} : vector<8x8xf32>, vector<8x16xf32>, vector<8x16xf32> -> vector<8x16xf32>
    %c0_25 = arith.constant 0 : index
    %c0_26 = arith.constant 0 : index
    %65 = vector.load %arg4[%c0_25, %c0_26] : memref<8x32xf32, #tpu.memory_space<vmem>>, vector<8x16xf32>
    tpu.vector_store %arg4[%c0_25, %c0_26], %64 {strides = array<i32>} : memref<8x32xf32, #tpu.memory_space<vmem>>, vector<8x16xf32>,
    %66 = vector.extract_strided_slice %46 {offsets = [0, 16], sizes = [8, 16], strides = [1, 1]} : vector<8x128xf32> to vector<8x16xf32>
    %67 = vector.extract_strided_slice %46 {offsets = [0, 48], sizes = [8, 16], strides = [1, 1]} : vector<8x128xf32> to vector<8x16xf32>
    %68 = vector.extract_strided_slice %46 {offsets = [0, 80], sizes = [8, 16], strides = [1, 1]} : vector<8x128xf32> to vector<8x16xf32>
    %cst_27 = arith.constant dense<0.000000e+00> : vector<8x8xf32>
    %69 = tpu.matmul %66, %67, %cst_27 {dimension_numbers = #tpu.dot_dimension_numbers<[1], [1], [0], [0], [0, 0, 1, 0], [], []>} : vector<8x16xf32>, vector<8x16xf32>, vector<8x8xf32> -> vector<8x8xf32>
    %cst_28 = arith.constant 2.500000e-01 : f32
    %70 = vector.broadcast %cst_28 : f32 to vector<8x8xf32>
    %71 = arith.mulf %69, %70 : vector<8x8xf32>
    %cst_29 = arith.constant dense<0xFF800000> : vector<8xf32>
    %72 = vector.multi_reduction <maximumf>, %71, %cst_29 [1] : vector<8x8xf32> to vector<8xf32>
    %73 = vector.shape_cast %72 : vector<8xf32> to vector<8x1xf32>
    %74 = vector.broadcast %73 : vector<8x1xf32> to vector<8x8xf32>
    %75 = arith.subf %71, %74 : vector<8x8xf32>
    %76 = math.exp %75 : vector<8x8xf32>
    %cst_30 = arith.constant dense<0.000000e+00> : vector<8xf32>
    %77 = vector.multi_reduction <add>, %76, %cst_30 [1] : vector<8x8xf32> to vector<8xf32>
    %78 = vector.shape_cast %77 : vector<8xf32> to vector<8x1xf32>
    %79 = vector.broadcast %78 : vector<8x1xf32> to vector<8x8xf32>
    %80 = arith.divf %76, %79 : vector<8x8xf32>
    %81 = tpu.concatenate %80, %41 in 1 : vector<8x8xf32>, vector<8x120xf32> -> vector<8x128xf32>
    %c8 = arith.constant 8 : index
    %c0_31 = arith.constant 0 : index
    %82 = vector.load %arg3[%c8, %c0_31] : memref<32x128xf32, #tpu.memory_space<vmem>>, vector<8x128xf32>
    tpu.vector_store %arg3[%c8, %c0_31], %81 {strides = array<i32>} : memref<32x128xf32, #tpu.memory_space<vmem>>, vector<8x128xf32>,
    %cst_32 = arith.constant dense<0.000000e+00> : vector<8x16xf32>
    %83 = tpu.matmul %80, %68, %cst_32 {dimension_numbers = #tpu.dot_dimension_numbers<[1], [0], [0], [1], [0, 0, 1, 1], [], []>} : vector<8x8xf32>, vector<8x16xf32>, vector<8x16xf32> -> vector<8x16xf32>
    %c0_33 = arith.constant 0 : index
    %c16 = arith.constant 16 : index
    %84 = vector.load %arg4[%c0_33, %c16] : memref<8x32xf32, #tpu.memory_space<vmem>>, vector<8x16xf32>
    tpu.vector_store %arg4[%c0_33, %c16], %83 {strides = array<i32>} : memref<8x32xf32, #tpu.memory_space<vmem>>, vector<8x16xf32>,
    %85 = vector.extract_strided_slice %42 {offsets = [0, 96], sizes = [32, 32], strides = [1, 1]} : vector<32x128xf32> to vector<32x32xf32>
    %c0_34 = arith.constant 0 : index
    %c0_35 = arith.constant 0 : index
    %86 = vector.load %arg4[%c0_34, %c0_35] : memref<8x32xf32, #tpu.memory_space<vmem>>, vector<8x32xf32>
    %cst_36 = arith.constant dense<0.000000e+00> : vector<8x32xf32>
    %87 = tpu.matmul %86, %85, %cst_36 {dimension_numbers = #tpu.dot_dimension_numbers<[1], [0], [0], [1], [0, 0, 1, 1], [], []>} : vector<8x32xf32>, vector<32x32xf32>, vector<8x32xf32> -> vector<8x32xf32>
    %c113 = arith.constant 113 : index
    %c0_37 = arith.constant 0 : index
    %88 = vector.load %arg1[%c113, %c0_37] : memref<232x128xf32, #tpu.memory_space<vmem>>, vector<1x128xf32>
    %89 = vector.extract_strided_slice %88 {offsets = [0, 0], sizes = [1, 32], strides = [1, 1]} : vector<1x128xf32> to vector<1x32xf32>
    %90 = vector.broadcast %89 : vector<1x32xf32> to vector<8x32xf32>
    %91 = arith.addf %87, %90 : vector<8x32xf32>
    %92 = arith.addf %40, %91 : vector<8x32xf32>
    %c114 = arith.constant 114 : index
    %c0_38 = arith.constant 0 : index
    %93 = vector.load %arg1[%c114, %c0_38] : memref<232x128xf32, #tpu.memory_space<vmem>>, vector<1x128xf32>
    %94 = vector.extract_strided_slice %93 {offsets = [0, 0], sizes = [1, 32], strides = [1, 1]} : vector<1x128xf32> to vector<1x32xf32>
    %c115 = arith.constant 115 : index
    %c0_39 = arith.constant 0 : index
    %95 = vector.load %arg1[%c115, %c0_39] : memref<232x128xf32, #tpu.memory_space<vmem>>, vector<1x128xf32>
    %96 = vector.extract_strided_slice %95 {offsets = [0, 0], sizes = [1, 32], strides = [1, 1]} : vector<1x128xf32> to vector<1x32xf32>
    %cst_40 = arith.constant dense<0.000000e+00> : vector<8xf32>
    %97 = vector.multi_reduction <add>, %92, %cst_40 [1] : vector<8x32xf32> to vector<8xf32>
    %98 = vector.shape_cast %97 : vector<8xf32> to vector<8x1xf32>
    %cst_41 = arith.constant 3.200000e+01 : f32
    %99 = vector.broadcast %cst_41 : f32 to vector<8x1xf32>
    %100 = arith.divf %98, %99 : vector<8x1xf32>
    %101 = vector.broadcast %100 : vector<8x1xf32> to vector<8x32xf32>
    %102 = arith.subf %92, %101 : vector<8x32xf32>
    %103 = arith.mulf %102, %102 : vector<8x32xf32>
    %cst_42 = arith.constant dense<0.000000e+00> : vector<8xf32>
    %104 = vector.multi_reduction <add>, %103, %cst_42 [1] : vector<8x32xf32> to vector<8xf32>
    %105 = vector.shape_cast %104 : vector<8xf32> to vector<8x1xf32>
    %cst_43 = arith.constant 3.200000e+01 : f32
    %106 = vector.broadcast %cst_43 : f32 to vector<8x1xf32>
    %107 = arith.divf %105, %106 : vector<8x1xf32>
    %108 = vector.broadcast %100 : vector<8x1xf32> to vector<8x32xf32>
    %109 = arith.subf %92, %108 : vector<8x32xf32>
    %cst_44 = arith.constant 9.99999996E-13 : f32
    %110 = vector.broadcast %cst_44 : f32 to vector<8x1xf32>
    %111 = arith.addf %107, %110 : vector<8x1xf32>
    %112 = math.rsqrt %111 : vector<8x1xf32>
    %113 = vector.broadcast %112 : vector<8x1xf32> to vector<8x32xf32>
    %114 = arith.mulf %109, %113 : vector<8x32xf32>
    %115 = vector.broadcast %94 : vector<1x32xf32> to vector<8x32xf32>
    %116 = arith.mulf %114, %115 : vector<8x32xf32>
    %117 = vector.broadcast %96 : vector<1x32xf32> to vector<8x32xf32>
    %118 = arith.addf %116, %117 : vector<8x32xf32>
    %c80 = arith.constant 80 : index
    %c0_45 = arith.constant 0 : index
    %119 = vector.load %arg1[%c80, %c0_45] : memref<232x128xf32, #tpu.memory_space<vmem>>, vector<32x128xf32>
    %120 = vector.extract_strided_slice %119 {offsets = [0, 0], sizes = [32, 64], strides = [1, 1]} : vector<32x128xf32> to vector<32x64xf32>
    %cst_46 = arith.constant dense<0.000000e+00> : vector<8x64xf32>
    %121 = tpu.matmul %118, %120, %cst_46 {dimension_numbers = #tpu.dot_dimension_numbers<[1], [0], [0], [1], [0, 0, 1, 1], [], []>} : vector<8x32xf32>, vector<32x64xf32>, vector<8x64xf32> -> vector<8x64xf32>
    %c116 = arith.constant 116 : index
    %c0_47 = arith.constant 0 : index
    %122 = vector.load %arg1[%c116, %c0_47] : memref<232x128xf32, #tpu.memory_space<vmem>>, vector<1x128xf32>
    %123 = vector.extract_strided_slice %122 {offsets = [0, 0], sizes = [1, 64], strides = [1, 1]} : vector<1x128xf32> to vector<1x64xf32>
    %124 = vector.broadcast %123 : vector<1x64xf32> to vector<8x64xf32>
    %125 = arith.addf %121, %124 : vector<8x64xf32>
    %126 = arith.mulf %125, %125 : vector<8x64xf32>
    %127 = arith.mulf %125, %126 : vector<8x64xf32>
    %cst_48 = arith.constant 4.471500e-02 : f32
    %128 = vector.broadcast %cst_48 : f32 to vector<8x64xf32>
    %129 = arith.mulf %128, %127 : vector<8x64xf32>
    %130 = arith.addf %125, %129 : vector<8x64xf32>
    %cst_49 = arith.constant 0.797884583 : f32
    %131 = vector.broadcast %cst_49 : f32 to vector<8x64xf32>
    %132 = arith.mulf %131, %130 : vector<8x64xf32>
    %133 = math.tanh %132 : vector<8x64xf32>
    %cst_50 = arith.constant 1.000000e+00 : f32
    %134 = vector.broadcast %cst_50 : f32 to vector<8x64xf32>
    %135 = arith.addf %134, %133 : vector<8x64xf32>
    %cst_51 = arith.constant 5.000000e-01 : f32
    %136 = vector.broadcast %cst_51 : f32 to vector<8x64xf32>
    %137 = arith.mulf %136, %135 : vector<8x64xf32>
    %138 = arith.mulf %125, %137 : vector<8x64xf32>
    %139 = vector.extract_strided_slice %119 {offsets = [0, 64], sizes = [32, 64], strides = [1, 1]} : vector<32x128xf32> to vector<32x64xf32>
    %cst_52 = arith.constant dense<0.000000e+00> : vector<8x32xf32>
    %140 = tpu.matmul %138, %139, %cst_52 {dimension_numbers = #tpu.dot_dimension_numbers<[1], [1], [0], [0], [0, 0, 1, 0], [], []>} : vector<8x64xf32>, vector<32x64xf32>, vector<8x32xf32> -> vector<8x32xf32>
    %c117 = arith.constant 117 : index
    %c0_53 = arith.constant 0 : index
    %141 = vector.load %arg1[%c117, %c0_53] : memref<232x128xf32, #tpu.memory_space<vmem>>, vector<1x128xf32>
    %142 = vector.extract_strided_slice %141 {offsets = [0, 0], sizes = [1, 32], strides = [1, 1]} : vector<1x128xf32> to vector<1x32xf32>
    %143 = vector.broadcast %142 : vector<1x32xf32> to vector<8x32xf32>
    %144 = arith.addf %140, %143 : vector<8x32xf32>
    %145 = arith.addf %118, %144 : vector<8x32xf32>
    %c118 = arith.constant 118 : index
    %c0_54 = arith.constant 0 : index
    %146 = vector.load %arg1[%c118, %c0_54] : memref<232x128xf32, #tpu.memory_space<vmem>>, vector<1x128xf32>
    %147 = vector.extract_strided_slice %146 {offsets = [0, 0], sizes = [1, 32], strides = [1, 1]} : vector<1x128xf32> to vector<1x32xf32>
    %c119 = arith.constant 119 : index
    %c0_55 = arith.constant 0 : index
    %148 = vector.load %arg1[%c119, %c0_55] : memref<232x128xf32, #tpu.memory_space<vmem>>, vector<1x128xf32>
    %149 = vector.extract_strided_slice %148 {offsets = [0, 0], sizes = [1, 32], strides = [1, 1]} : vector<1x128xf32> to vector<1x32xf32>
    %cst_56 = arith.constant dense<0.000000e+00> : vector<8xf32>
    %150 = vector.multi_reduction <add>, %145, %cst_56 [1] : vector<8x32xf32> to vector<8xf32>
    %151 = vector.shape_cast %150 : vector<8xf32> to vector<8x1xf32>
    %cst_57 = arith.constant 3.200000e+01 : f32
    %152 = vector.broadcast %cst_57 : f32 to vector<8x1xf32>
    %153 = arith.divf %151, %152 : vector<8x1xf32>
    %154 = vector.broadcast %153 : vector<8x1xf32> to vector<8x32xf32>
    %155 = arith.subf %145, %154 : vector<8x32xf32>
    %156 = arith.mulf %155, %155 : vector<8x32xf32>
    %cst_58 = arith.constant dense<0.000000e+00> : vector<8xf32>
    %157 = vector.multi_reduction <add>, %156, %cst_58 [1] : vector<8x32xf32> to vector<8xf32>
    %158 = vector.shape_cast %157 : vector<8xf32> to vector<8x1xf32>
    %cst_59 = arith.constant 3.200000e+01 : f32
    %159 = vector.broadcast %cst_59 : f32 to vector<8x1xf32>
    %160 = arith.divf %158, %159 : vector<8x1xf32>
    %161 = vector.broadcast %153 : vector<8x1xf32> to vector<8x32xf32>
    %162 = arith.subf %145, %161 : vector<8x32xf32>
    %cst_60 = arith.constant 9.99999996E-13 : f32
    %163 = vector.broadcast %cst_60 : f32 to vector<8x1xf32>
    %164 = arith.addf %160, %163 : vector<8x1xf32>
    %165 = math.rsqrt %164 : vector<8x1xf32>
    %166 = vector.broadcast %165 : vector<8x1xf32> to vector<8x32xf32>
    %167 = arith.mulf %162, %166 : vector<8x32xf32>
    %168 = vector.broadcast %147 : vector<1x32xf32> to vector<8x32xf32>
    %169 = arith.mulf %167, %168 : vector<8x32xf32>
    %170 = vector.broadcast %149 : vector<1x32xf32> to vector<8x32xf32>
    %171 = arith.addf %169, %170 : vector<8x32xf32>
    %c120 = arith.constant 120 : index
    %c0_61 = arith.constant 0 : index
    %172 = vector.load %arg1[%c120, %c0_61] : memref<232x128xf32, #tpu.memory_space<vmem>>, vector<32x128xf32>
    %cst_62 = arith.constant dense<0.000000e+00> : vector<8x128xf32>
    %173 = tpu.matmul %171, %172, %cst_62 {dimension_numbers = #tpu.dot_dimension_numbers<[1], [0], [0], [1], [0, 0, 1, 1], [], []>} : vector<8x32xf32>, vector<32x128xf32>, vector<8x128xf32> -> vector<8x128xf32>
    %c184 = arith.constant 184 : index
    %c0_63 = arith.constant 0 : index
    %174 = vector.load %arg1[%c184, %c0_63] : memref<232x128xf32, #tpu.memory_space<vmem>>, vector<1x128xf32>
    %175 = vector.broadcast %174 : vector<1x128xf32> to vector<8x128xf32>
    %176 = arith.addf %173, %175 : vector<8x128xf32>
    %177 = vector.extract_strided_slice %176 {offsets = [0, 0], sizes = [8, 16], strides = [1, 1]} : vector<8x128xf32> to vector<8x16xf32>
    %178 = vector.extract_strided_slice %176 {offsets = [0, 32], sizes = [8, 16], strides = [1, 1]} : vector<8x128xf32> to vector<8x16xf32>
    %179 = vector.extract_strided_slice %176 {offsets = [0, 64], sizes = [8, 16], strides = [1, 1]} : vector<8x128xf32> to vector<8x16xf32>
    %cst_64 = arith.constant dense<0.000000e+00> : vector<8x8xf32>
    %180 = tpu.matmul %177, %178, %cst_64 {dimension_numbers = #tpu.dot_dimension_numbers<[1], [1], [0], [0], [0, 0, 1, 0], [], []>} : vector<8x16xf32>, vector<8x16xf32>, vector<8x8xf32> -> vector<8x8xf32>
    %cst_65 = arith.constant 2.500000e-01 : f32
    %181 = vector.broadcast %cst_65 : f32 to vector<8x8xf32>
    %182 = arith.mulf %180, %181 : vector<8x8xf32>
    %cst_66 = arith.constant dense<0xFF800000> : vector<8xf32>
    %183 = vector.multi_reduction <maximumf>, %182, %cst_66 [1] : vector<8x8xf32> to vector<8xf32>
    %184 = vector.shape_cast %183 : vector<8xf32> to vector<8x1xf32>
    %185 = vector.broadcast %184 : vector<8x1xf32> to vector<8x8xf32>
    %186 = arith.subf %182, %185 : vector<8x8xf32>
    %187 = math.exp %186 : vector<8x8xf32>
    %cst_67 = arith.constant dense<0.000000e+00> : vector<8xf32>
    %188 = vector.multi_reduction <add>, %187, %cst_67 [1] : vector<8x8xf32> to vector<8xf32>
    %189 = vector.shape_cast %188 : vector<8xf32> to vector<8x1xf32>
    %190 = vector.broadcast %189 : vector<8x1xf32> to vector<8x8xf32>
    %191 = arith.divf %187, %190 : vector<8x8xf32>
    %192 = tpu.concatenate %191, %41 in 1 : vector<8x8xf32>, vector<8x120xf32> -> vector<8x128xf32>
    %c16_68 = arith.constant 16 : index
    %c0_69 = arith.constant 0 : index
    %193 = vector.load %arg3[%c16_68, %c0_69] : memref<32x128xf32, #tpu.memory_space<vmem>>, vector<8x128xf32>
    tpu.vector_store %arg3[%c16_68, %c0_69], %192 {strides = array<i32>} : memref<32x128xf32, #tpu.memory_space<vmem>>, vector<8x128xf32>,
    %cst_70 = arith.constant dense<0.000000e+00> : vector<8x16xf32>
    %194 = tpu.matmul %191, %179, %cst_70 {dimension_numbers = #tpu.dot_dimension_numbers<[1], [0], [0], [1], [0, 0, 1, 1], [], []>} : vector<8x8xf32>, vector<8x16xf32>, vector<8x16xf32> -> vector<8x16xf32>
    %c0_71 = arith.constant 0 : index
    %c0_72 = arith.constant 0 : index
    %195 = vector.load %arg4[%c0_71, %c0_72] : memref<8x32xf32, #tpu.memory_space<vmem>>, vector<8x16xf32>
    tpu.vector_store %arg4[%c0_71, %c0_72], %194 {strides = array<i32>} : memref<8x32xf32, #tpu.memory_space<vmem>>, vector<8x16xf32>,
    %196 = vector.extract_strided_slice %176 {offsets = [0, 16], sizes = [8, 16], strides = [1, 1]} : vector<8x128xf32> to vector<8x16xf32>
    %197 = vector.extract_strided_slice %176 {offsets = [0, 48], sizes = [8, 16], strides = [1, 1]} : vector<8x128xf32> to vector<8x16xf32>
    %198 = vector.extract_strided_slice %176 {offsets = [0, 80], sizes = [8, 16], strides = [1, 1]} : vector<8x128xf32> to vector<8x16xf32>
    %cst_73 = arith.constant dense<0.000000e+00> : vector<8x8xf32>
    %199 = tpu.matmul %196, %197, %cst_73 {dimension_numbers = #tpu.dot_dimension_numbers<[1], [1], [0], [0], [0, 0, 1, 0], [], []>} : vector<8x16xf32>, vector<8x16xf32>, vector<8x8xf32> -> vector<8x8xf32>
    %cst_74 = arith.constant 2.500000e-01 : f32
    %200 = vector.broadcast %cst_74 : f32 to vector<8x8xf32>
    %201 = arith.mulf %199, %200 : vector<8x8xf32>
    %cst_75 = arith.constant dense<0xFF800000> : vector<8xf32>
    %202 = vector.multi_reduction <maximumf>, %201, %cst_75 [1] : vector<8x8xf32> to vector<8xf32>
    %203 = vector.shape_cast %202 : vector<8xf32> to vector<8x1xf32>
    %204 = vector.broadcast %203 : vector<8x1xf32> to vector<8x8xf32>
    %205 = arith.subf %201, %204 : vector<8x8xf32>
    %206 = math.exp %205 : vector<8x8xf32>
    %cst_76 = arith.constant dense<0.000000e+00> : vector<8xf32>
    %207 = vector.multi_reduction <add>, %206, %cst_76 [1] : vector<8x8xf32> to vector<8xf32>
    %208 = vector.shape_cast %207 : vector<8xf32> to vector<8x1xf32>
    %209 = vector.broadcast %208 : vector<8x1xf32> to vector<8x8xf32>
    %210 = arith.divf %206, %209 : vector<8x8xf32>
    %211 = tpu.concatenate %210, %41 in 1 : vector<8x8xf32>, vector<8x120xf32> -> vector<8x128xf32>
    %c24 = arith.constant 24 : index
    %c0_77 = arith.constant 0 : index
    %212 = vector.load %arg3[%c24, %c0_77] : memref<32x128xf32, #tpu.memory_space<vmem>>, vector<8x128xf32>
    tpu.vector_store %arg3[%c24, %c0_77], %211 {strides = array<i32>} : memref<32x128xf32, #tpu.memory_space<vmem>>, vector<8x128xf32>,
    %cst_78 = arith.constant dense<0.000000e+00> : vector<8x16xf32>
    %213 = tpu.matmul %210, %198, %cst_78 {dimension_numbers = #tpu.dot_dimension_numbers<[1], [0], [0], [1], [0, 0, 1, 1], [], []>} : vector<8x8xf32>, vector<8x16xf32>, vector<8x16xf32> -> vector<8x16xf32>
    %c0_79 = arith.constant 0 : index
    %c16_80 = arith.constant 16 : index
    %214 = vector.load %arg4[%c0_79, %c16_80] : memref<8x32xf32, #tpu.memory_space<vmem>>, vector<8x16xf32>
    tpu.vector_store %arg4[%c0_79, %c16_80], %213 {strides = array<i32>} : memref<8x32xf32, #tpu.memory_space<vmem>>, vector<8x16xf32>,
    %215 = vector.extract_strided_slice %172 {offsets = [0, 96], sizes = [32, 32], strides = [1, 1]} : vector<32x128xf32> to vector<32x32xf32>
    %c0_81 = arith.constant 0 : index
    %c0_82 = arith.constant 0 : index
    %216 = vector.load %arg4[%c0_81, %c0_82] : memref<8x32xf32, #tpu.memory_space<vmem>>, vector<8x32xf32>
    %cst_83 = arith.constant dense<0.000000e+00> : vector<8x32xf32>
    %217 = tpu.matmul %216, %215, %cst_83 {dimension_numbers = #tpu.dot_dimension_numbers<[1], [0], [0], [1], [0, 0, 1, 1], [], []>} : vector<8x32xf32>, vector<32x32xf32>, vector<8x32xf32> -> vector<8x32xf32>
    %c185 = arith.constant 185 : index
    %c0_84 = arith.constant 0 : index
    %218 = vector.load %arg1[%c185, %c0_84] : memref<232x128xf32, #tpu.memory_space<vmem>>, vector<1x128xf32>
    %219 = vector.extract_strided_slice %218 {offsets = [0, 0], sizes = [1, 32], strides = [1, 1]} : vector<1x128xf32> to vector<1x32xf32>
    %220 = vector.broadcast %219 : vector<1x32xf32> to vector<8x32xf32>
    %221 = arith.addf %217, %220 : vector<8x32xf32>
    %222 = arith.addf %171, %221 : vector<8x32xf32>
    %c186 = arith.constant 186 : index
    %c0_85 = arith.constant 0 : index
    %223 = vector.load %arg1[%c186, %c0_85] : memref<232x128xf32, #tpu.memory_space<vmem>>, vector<1x128xf32>
    %224 = vector.extract_strided_slice %223 {offsets = [0, 0], sizes = [1, 32], strides = [1, 1]} : vector<1x128xf32> to vector<1x32xf32>
    %c187 = arith.constant 187 : index
    %c0_86 = arith.constant 0 : index
    %225 = vector.load %arg1[%c187, %c0_86] : memref<232x128xf32, #tpu.memory_space<vmem>>, vector<1x128xf32>
    %226 = vector.extract_strided_slice %225 {offsets = [0, 0], sizes = [1, 32], strides = [1, 1]} : vector<1x128xf32> to vector<1x32xf32>
    %cst_87 = arith.constant dense<0.000000e+00> : vector<8xf32>
    %227 = vector.multi_reduction <add>, %222, %cst_87 [1] : vector<8x32xf32> to vector<8xf32>
    %228 = vector.shape_cast %227 : vector<8xf32> to vector<8x1xf32>
    %cst_88 = arith.constant 3.200000e+01 : f32
    %229 = vector.broadcast %cst_88 : f32 to vector<8x1xf32>
    %230 = arith.divf %228, %229 : vector<8x1xf32>
    %231 = vector.broadcast %230 : vector<8x1xf32> to vector<8x32xf32>
    %232 = arith.subf %222, %231 : vector<8x32xf32>
    %233 = arith.mulf %232, %232 : vector<8x32xf32>
    %cst_89 = arith.constant dense<0.000000e+00> : vector<8xf32>
    %234 = vector.multi_reduction <add>, %233, %cst_89 [1] : vector<8x32xf32> to vector<8xf32>
    %235 = vector.shape_cast %234 : vector<8xf32> to vector<8x1xf32>
    %cst_90 = arith.constant 3.200000e+01 : f32
    %236 = vector.broadcast %cst_90 : f32 to vector<8x1xf32>
    %237 = arith.divf %235, %236 : vector<8x1xf32>
    %238 = vector.broadcast %230 : vector<8x1xf32> to vector<8x32xf32>
    %239 = arith.subf %222, %238 : vector<8x32xf32>
    %cst_91 = arith.constant 9.99999996E-13 : f32
    %240 = vector.broadcast %cst_91 : f32 to vector<8x1xf32>
    %241 = arith.addf %237, %240 : vector<8x1xf32>
    %242 = math.rsqrt %241 : vector<8x1xf32>
    %243 = vector.broadcast %242 : vector<8x1xf32> to vector<8x32xf32>
    %244 = arith.mulf %239, %243 : vector<8x32xf32>
    %245 = vector.broadcast %224 : vector<1x32xf32> to vector<8x32xf32>
    %246 = arith.mulf %244, %245 : vector<8x32xf32>
    %247 = vector.broadcast %226 : vector<1x32xf32> to vector<8x32xf32>
    %248 = arith.addf %246, %247 : vector<8x32xf32>
    %c152 = arith.constant 152 : index
    %c0_92 = arith.constant 0 : index
    %249 = vector.load %arg1[%c152, %c0_92] : memref<232x128xf32, #tpu.memory_space<vmem>>, vector<32x128xf32>
    %250 = vector.extract_strided_slice %249 {offsets = [0, 0], sizes = [32, 64], strides = [1, 1]} : vector<32x128xf32> to vector<32x64xf32>
    %cst_93 = arith.constant dense<0.000000e+00> : vector<8x64xf32>
    %251 = tpu.matmul %248, %250, %cst_93 {dimension_numbers = #tpu.dot_dimension_numbers<[1], [0], [0], [1], [0, 0, 1, 1], [], []>} : vector<8x32xf32>, vector<32x64xf32>, vector<8x64xf32> -> vector<8x64xf32>
    %c188 = arith.constant 188 : index
    %c0_94 = arith.constant 0 : index
    %252 = vector.load %arg1[%c188, %c0_94] : memref<232x128xf32, #tpu.memory_space<vmem>>, vector<1x128xf32>
    %253 = vector.extract_strided_slice %252 {offsets = [0, 0], sizes = [1, 64], strides = [1, 1]} : vector<1x128xf32> to vector<1x64xf32>
    %254 = vector.broadcast %253 : vector<1x64xf32> to vector<8x64xf32>
    %255 = arith.addf %251, %254 : vector<8x64xf32>
    %256 = arith.mulf %255, %255 : vector<8x64xf32>
    %257 = arith.mulf %255, %256 : vector<8x64xf32>
    %cst_95 = arith.constant 4.471500e-02 : f32
    %258 = vector.broadcast %cst_95 : f32 to vector<8x64xf32>
    %259 = arith.mulf %258, %257 : vector<8x64xf32>
    %260 = arith.addf %255, %259 : vector<8x64xf32>
    %cst_96 = arith.constant 0.797884583 : f32
    %261 = vector.broadcast %cst_96 : f32 to vector<8x64xf32>
    %262 = arith.mulf %261, %260 : vector<8x64xf32>
    %263 = math.tanh %262 : vector<8x64xf32>
    %cst_97 = arith.constant 1.000000e+00 : f32
    %264 = vector.broadcast %cst_97 : f32 to vector<8x64xf32>
    %265 = arith.addf %264, %263 : vector<8x64xf32>
    %cst_98 = arith.constant 5.000000e-01 : f32
    %266 = vector.broadcast %cst_98 : f32 to vector<8x64xf32>
    %267 = arith.mulf %266, %265 : vector<8x64xf32>
    %268 = arith.mulf %255, %267 : vector<8x64xf32>
    %269 = vector.extract_strided_slice %249 {offsets = [0, 64], sizes = [32, 64], strides = [1, 1]} : vector<32x128xf32> to vector<32x64xf32>
    %cst_99 = arith.constant dense<0.000000e+00> : vector<8x32xf32>
    %270 = tpu.matmul %268, %269, %cst_99 {dimension_numbers = #tpu.dot_dimension_numbers<[1], [1], [0], [0], [0, 0, 1, 0], [], []>} : vector<8x64xf32>, vector<32x64xf32>, vector<8x32xf32> -> vector<8x32xf32>
    %c189 = arith.constant 189 : index
    %c0_100 = arith.constant 0 : index
    %271 = vector.load %arg1[%c189, %c0_100] : memref<232x128xf32, #tpu.memory_space<vmem>>, vector<1x128xf32>
    %272 = vector.extract_strided_slice %271 {offsets = [0, 0], sizes = [1, 32], strides = [1, 1]} : vector<1x128xf32> to vector<1x32xf32>
    %273 = vector.broadcast %272 : vector<1x32xf32> to vector<8x32xf32>
    %274 = arith.addf %270, %273 : vector<8x32xf32>
    %275 = arith.addf %248, %274 : vector<8x32xf32>
    %c190 = arith.constant 190 : index
    %c0_101 = arith.constant 0 : index
    %276 = vector.load %arg1[%c190, %c0_101] : memref<232x128xf32, #tpu.memory_space<vmem>>, vector<1x128xf32>
    %277 = vector.extract_strided_slice %276 {offsets = [0, 0], sizes = [1, 32], strides = [1, 1]} : vector<1x128xf32> to vector<1x32xf32>
    %c191 = arith.constant 191 : index
    %c0_102 = arith.constant 0 : index
    %278 = vector.load %arg1[%c191, %c0_102] : memref<232x128xf32, #tpu.memory_space<vmem>>, vector<1x128xf32>
    %279 = vector.extract_strided_slice %278 {offsets = [0, 0], sizes = [1, 32], strides = [1, 1]} : vector<1x128xf32> to vector<1x32xf32>
    %cst_103 = arith.constant dense<0.000000e+00> : vector<8xf32>
    %280 = vector.multi_reduction <add>, %275, %cst_103 [1] : vector<8x32xf32> to vector<8xf32>
    %281 = vector.shape_cast %280 : vector<8xf32> to vector<8x1xf32>
    %cst_104 = arith.constant 3.200000e+01 : f32
    %282 = vector.broadcast %cst_104 : f32 to vector<8x1xf32>
    %283 = arith.divf %281, %282 : vector<8x1xf32>
    %284 = vector.broadcast %283 : vector<8x1xf32> to vector<8x32xf32>
    %285 = arith.subf %275, %284 : vector<8x32xf32>
    %286 = arith.mulf %285, %285 : vector<8x32xf32>
    %cst_105 = arith.constant dense<0.000000e+00> : vector<8xf32>
    %287 = vector.multi_reduction <add>, %286, %cst_105 [1] : vector<8x32xf32> to vector<8xf32>
    %288 = vector.shape_cast %287 : vector<8xf32> to vector<8x1xf32>
    %cst_106 = arith.constant 3.200000e+01 : f32
    %289 = vector.broadcast %cst_106 : f32 to vector<8x1xf32>
    %290 = arith.divf %288, %289 : vector<8x1xf32>
    %291 = vector.broadcast %283 : vector<8x1xf32> to vector<8x32xf32>
    %292 = arith.subf %275, %291 : vector<8x32xf32>
    %cst_107 = arith.constant 9.99999996E-13 : f32
    %293 = vector.broadcast %cst_107 : f32 to vector<8x1xf32>
    %294 = arith.addf %290, %293 : vector<8x1xf32>
    %295 = math.rsqrt %294 : vector<8x1xf32>
    %296 = vector.broadcast %295 : vector<8x1xf32> to vector<8x32xf32>
    %297 = arith.mulf %292, %296 : vector<8x32xf32>
    %298 = vector.broadcast %277 : vector<1x32xf32> to vector<8x32xf32>
    %299 = arith.mulf %297, %298 : vector<8x32xf32>
    %300 = vector.broadcast %279 : vector<1x32xf32> to vector<8x32xf32>
    %301 = arith.addf %299, %300 : vector<8x32xf32>
    %302 = vector.extract_strided_slice %301 {offsets = [0, 0], sizes = [1, 32], strides = [1, 1]} : vector<8x32xf32> to vector<1x32xf32>
    %c192 = arith.constant 192 : index
    %c0_108 = arith.constant 0 : index
    %303 = vector.load %arg1[%c192, %c0_108] : memref<232x128xf32, #tpu.memory_space<vmem>>, vector<32x128xf32>
    %cst_109 = arith.constant dense<0.000000e+00> : vector<1x128xf32>
    %304 = tpu.matmul %302, %303, %cst_109 {dimension_numbers = #tpu.dot_dimension_numbers<[1], [0], [0], [1], [0, 0, 1, 1], [], []>} : vector<1x32xf32>, vector<32x128xf32>, vector<1x128xf32> -> vector<1x128xf32>
    %c224 = arith.constant 224 : index
    %c0_110 = arith.constant 0 : index
    %305 = vector.load %arg1[%c224, %c0_110] : memref<232x128xf32, #tpu.memory_space<vmem>>, vector<1x128xf32>
    %306 = arith.addf %304, %305 : vector<1x128xf32>
    %cst_111 = arith.constant dense<0xFF800000> : vector<1xf32>
    %307 = vector.multi_reduction <maximumf>, %306, %cst_111 [1] : vector<1x128xf32> to vector<1xf32>
    %308 = vector.shape_cast %307 : vector<1xf32> to vector<1x1xf32>
    %309 = vector.broadcast %308 : vector<1x1xf32> to vector<1x128xf32>
    %310 = arith.subf %306, %309 : vector<1x128xf32>
    %311 = math.exp %310 : vector<1x128xf32>
    %cst_112 = arith.constant dense<0.000000e+00> : vector<1xf32>
    %312 = vector.multi_reduction <add>, %311, %cst_112 [1] : vector<1x128xf32> to vector<1xf32>
    %313 = vector.shape_cast %312 : vector<1xf32> to vector<1x1xf32>
    %314 = tpu.reciprocal %313 {approx = true} : vector<1x1xf32> -> vector<1x1xf32>
    %315 = vector.broadcast %314 : vector<1x1xf32> to vector<1x128xf32>
    %316 = arith.mulf %311, %315 : vector<1x128xf32>
    %c0_113 = arith.constant 0 : index
    %c0_114 = arith.constant 0 : index
    %317 = vector.load %arg2[%c0_113, %c0_114] : memref<1x128xf32, #tpu.memory_space<vmem>>, vector<1x128xf32>
    tpu.vector_store %arg2[%c0_113, %c0_114], %316 {strides = array<i32>} : memref<1x128xf32, #tpu.memory_space<vmem>>, vector<1x128xf32>,
    return
  }
}

</mosaic_0001>

<bundles_post_ra>
// kernel: substrate_classifier_forward.1
= control target key start
LH: loop header
LB: loop body
LE: loop exit
PB: predicated region body
PF: predicated region fallthrough
CT: control target
= control target key end

     0   :  { %9 = vsyncpa [#allocation4], 0  ;;  %s2510_s0 = inlined_call_operand.vmem [shape: s32[8,1], index: 0, kind: input, shape index: {}]   ;;  %s2511_s1 = inlined_call_operand.hbm [shape: f32[232,128], index: 1, kind: input, shape index: {}]   ;;  %s2512_s2 = inlined_call_operand.hbm [shape: f32[1,128], index: 2, kind: output, shape index: {0}]   ;;  %s2513_s3 = inlined_call_operand.vmem [shape: f32[32,128], index: 3, kind: output, shape index: {1}]  }
   0x1   :  { %10 = vsyncpa [#allocation5], 0  ;;  %s2246_s12 = smov [#allocation3]   ;;  %s2198_s16 = scalar_lea.hbm %s2511_s1, 3712 }
   0x2   :  { %s18_s13 = sshll.u32 %s2246_s12, 4  ;;  %p2199_p0 = scmp.ne.s32.totalorder %s2511_s1, %s2198_s16  ;;  %s19_s13 = int_to_ptr.vmem [resolvable:$true] %s18_s13 }
   0x3   :  { %p2202_p1 = scmp.lt.u32.totalorder %s2198_s16, %s2511_s1 }
   0x5   :  { %p2204_p2 = pnand %p2202_p1, %p2199_p0 }
   0x7   :  { %2207 = shalt.err (!%p2204_p2)
}
   0x8   :  { %s2208_s21 = scalar_lea.vmem %s19_s13, 3712  ;;  %p2213_p4 = scmp.lt.s32.totalorder %s19_s13, %s19_s13 }
   0x9   :  { %p2209_p3 = scmp.ne.s32.totalorder %s19_s13, %s2208_s21  ;;  %p2214_p5 = scmp.lt.s32.totalorder %s2208_s21, %s2208_s21 }
   0xb   :  { %p2215_p6 = por %p2214_p5, %p2213_p4 }
   0xd   :  { %p2216_p7 = pnand %p2215_p6, %p2209_p3 }
   0xf   :  { %2219 = shalt.err (!%p2216_p7)
}
  0x10   :  { %s2247_s22 = smov 128   ;;  %s2248_s23 = smov 8  }
  0x11   :  { %24 = dma.hbm_to_vmem [thread:$0]  %s2511_s1, 3712, %s19_s13, [#allocation4], %s2247_s22, %s2247_s22, %s2248_s23  }
  0x12   :  { %2242 = dma.done.wait [#allocation4], 3712  }
  0x13   :  { %2243 = vsyncadd [#allocation4], 4294963584  ;;  %v2249_v0 = vmov 0   ;;  %v2250_v1 = vmov 0.0|0.0   ;;  %v28_v2 = vld [vmem:[%s2510_s0] sm:$0xff]  ;;  %v36_v3 = vld [vmem:[#allocation3] sm:$0xff]  ;;  %v29_v10 = vlaneseq }
  0x14   :  { %2123 = vset.pattern.permute.xlu0 %v2249_v0  ;;  %2044 = vmatprep.subr.bf16.mxu0 %v2250_v1  ;;  %v37_v4 = vld [vmem:[#allocation3 + $0x8] sm:$0xff]  ;;  %v38_v6 = vld [vmem:[#allocation3 + $0x10] sm:$0xff]  ;;  %v39_v7 = vld [vmem:[#allocation3 + $0x18] sm:$0xff]  ;;  %vm2251_vm0 = vmmov 0   ;;  %v2252_v8 = vmov 0.0   ;;  %vm41_vm1 = vcmask 261120  }
  0x15   :  { %2050 = vmatprep.subr.bf16.mxu1 %v2250_v1  ;;  %32 = vperm.xlu0 %2123, %v28_v2   ;;  %v2045_v5 = vpack.c.bf16 %v37_v4, %v36_v3  ;;  %v2048_v9 = vpack.c.bf16 %v39_v7, %v38_v6  ;;  %v30_v11 = vand.u32 127, %v29_v10  ;;  %v40_v14 = vld [vmem:[#allocation3 + $0x20] sm:$0xff]  ;;  %v1780_v16 = vld [vmem:[#allocation3 + $0x28] ss:$0 sm:$0xff]  ;;  %v2310_v26 = vld [vmem:[#allocation3 + $0x30] sm:$0xff]  ;;  %s2253_s0 = smov 96  }
  0x16   :  { %1902 = vmatprep.mubr.msk.f32.mxu0 %vm2251_vm0, %v2252_v8  ;;  %1913 = vmatprep.mubr.msk.f32.mxu1 %vm2251_vm0, %v2252_v8  ;;  %v2312_v27 = vld [vmem:[#allocation3 + $0x38] sm:$0xff]  ;;  %v2314_v28 = vld [vmem:[#allocation3 + $0x40] sm:$0xff]  ;;  %v2320_v31 = vld [vmem:[#allocation3 + $0x48] sm:$0xff]  ;;  %s2254_s1 = smov 80   ;;  %s2255_s28 = smov 112   ;;  %vm232_vm3 = vcmask 130048  }
  0x17   :  { %2046 = vmatpush3.bf16.msra.mxu0 %v2045_v5  ;;  %v2124_v29 = vpack.i.bf16 %v2312_v27, %v2310_v26  ;;  %v2051_v30 = vpack.c.bf16 %v2312_v27, %v2310_v26  ;;  %v2054_v32 = vpack.c.bf16 %v2320_v31, %v2314_v28  ;;  %v1781_v37 = vld [vmem:[#allocation3 + $0x29] ss:$0 sm:$0xff]  ;;  %v1782_v39 = vld [vmem:[#allocation3 + $0x2a] ss:$0 sm:$0xff]  ;;  %v1783_v42 = vld [vmem:[#allocation3 + $0x70] ss:$0 sm:$0xff] }
  0x18   :  { %2047 = vmatprep.subr.bf16.mxu0 %v2250_v1  ;;  %vm308_vm4 = vcmask 64512   ;;  %s2256_s29 = smov 48   ;;  %s2257_s30 = smov 64   ;;  %vm571_vm5 = vcmask 261248   ;;  %vm802_vm6 = vcmask 523264   ;;  %vm1747_vm8 = vcmask 1040384  }
  0x19   :  { %2052 = vmatpush3.bf16.msra.mxu1 %v2051_v30  ;;  %s2258_s8 = smov 32   ;;  %s2259_s9 = smov 16   ;;  %vm2394_vm7 = vmpackc.low %vm802_vm6, %vm802_vm6 }
  0x1a   :  { %2053 = vmatprep.subr.bf16.mxu1 %v2250_v1 }
  0x1b   :  { %2049 = vmatpush3.bf16.msra.mxu0 %v2048_v9 }
  0x1c   :  { %1926 = vmatprep.subr.mxu0 %v2252_v8 }
  0x1d   :  { %2055 = vmatpush3.bf16.msra.mxu1 %v2054_v32 }
  0x1e   :  { %1916 = vmatprep.subr.mxu1 %v2252_v8 }
  0x94   :  { %v33_v12 = vpop.permute.xlu0 %32 }
  0x95   :  { %vm34_vm2 = vcmp.eq.s32.totalorder %v30_v11, %v33_v12 }
  0x96   :  { %v35_v13 = vsel %vm34_vm2, 1.0, %v2252_v8 }
  0x97   :  { %1903 = vmatmul.mubr.msk.f32.vlgmr.msra.gmra.mrb[0].mxu0 %vm41_vm1, %v35_v13 }
  0x98   :  { %1928 = vmatprep.mubr.msk.f32.mxu0 %vm2251_vm0, %v2252_v8 }
 0x16a   :  { %v111_v15 = vpop.f32.mrb[0].mxu0 }
 0x16b   :  { %v112_v17 = vadd.f32 %v111_v15, %v40_v14  ;;  %v1904_v18 = vpop.f32.mrb[1].mxu0 }
 0x16d   :  { %v120_v19 = vadd.f32 %v1780_v16, %v112_v17 }
 0x16f   :  { %v123_v20 = vsel %vm41_vm1, %v120_v19, 0.0 }
 0x170   :  { %124 = vadd.xlane.f32.xlu0 %v123_v20 }
 0x1fd   :  { %v125_v21 = vpop.xlane.xlu0 %124 }
 0x1fe   :  { %v127_v22 = vmul.f32 0.03125, %v125_v21 }
 0x200   :  { %v128_v23 = vsub.f32 %v120_v19, %v127_v22 }
 0x202   :  { %v129_v24 = vmul.f32 %v128_v23, %v128_v23 }
 0x204   :  { %v130_v25 = vsel %vm41_vm1, %v129_v24, 0.0 }
 0x205   :  { %131 = vadd.xlane.f32.xlu1 %v130_v25 }
 0x292   :  { %v132_v33 = vpop.xlane.xlu1 %131 }
 0x293   :  { %v133_v34 = vmul.f32 0.03125, %v132_v33 }
 0x295   :  { %v134_v35 = vadd.f32 1e-12, %v133_v34 }
 0x297   :  { %2164 = vrsqrt.f32 %v134_v35 }
 0x2a1   :  { %v2165_v36 = vpop.eup %2164 }
 0x2a2   :  { %v136_v38 = vmul.f32 %v2165_v36, %v128_v23  ;;  %v2129_v23 = vpack.i.bf16 %v2320_v31, %v2314_v28  ;;  %v1791_v28 = vld [vmem:[#allocation3 + $0x71] ss:$0 sm:$0xff] }
 0x2a4   :  { %v141_v40 = vmul.f32 %v1781_v37, %v136_v38 }
 0x2a6   :  { %v2326_v41 = vadd.f32 %v1782_v39, %v141_v40 }
 0x2a8   :  { %1914 = vmatmul.mubr.msk.f32.vlgmr.msra.gmra.mrb[0].mxu1 %vm41_vm1, %v2326_v41 }
 0x2a9   :  { %1918 = vmatprep.mubr.msk.f32.mxu1 %vm2251_vm0, %v2252_v8 }
 0x37b   :  { %v225_v43 = vpop.f32.mrb[0].mxu1 }
 0x37c   :  { %v226_v44 = vadd.f32 %v1783_v42, %v225_v43  ;;  %v1915_v45 = vpop.f32.mrb[1].mxu1  ;;  %v694_v42 = vld [vmem:[#allocation3 + $0x50] sm:$0xff]  ;;  %v695_v43 = vld [vmem:[#allocation3 + $0x58] sm:$0xff] }
 0x37d   :  { %v696_v45 = vld [vmem:[#allocation3 + $0x60] sm:$0xff] }
 0x37e   :  { %230 = vrot.lane.b32.xlu1 %v226_v44, %s2253_s0 }
 0x382   :  { %401 = vrot.lane.b32.xlu1 %v226_v44, %s2254_s1 }
 0x386   :  { %399 = vrot.lane.b32.xlu1 %v226_v44, %s2255_s28 }
 0x3f0   :  { %v231_v46 = vpop.permute.xlu1 %230 }
 0x3f1   :  { %1917 = vmatpush3.xpose.msk.msra.mxu1 %vm232_vm3, %v231_v46  ;;  %v697_v46 = vld [vmem:[#allocation3 + $0x68] sm:$0xff] }
 0x3f2   :  { %1921 = vmatprep.subr.mxu1 %v2252_v8 }
 0x3f4   :  { %1919 = vmatmul.mubr.msk.f32.vlgmr.msra.gmra.mrb[2].mxu1 %vm232_vm3, %v226_v44  ;;  %v402_v47 = vpop.permute.xlu1 %401 }
 0x3f5   :  { %1927 = vmatpush3.xpose.msk.msra.mxu0 %vm232_vm3, %v402_v47  ;;  %1923 = vmatprep.mubr.msk.f32.mxu1 %vm2251_vm0, %v2252_v8  ;;  %v2066_v47 = vpack.c.bf16 %v697_v46, %v696_v45 }
 0x3f6   :  { %2056 = vmatprep.subr.bf16.mxu0 %v2250_v1 }
 0x3f8   :  { %v400_v48 = vpop.permute.xlu1 %399 }
 0x3f9   :  { %1929 = vmatmul.mubr.msk.f32.vlgmr.msra.gmra.mrb[2].mxu0 %vm232_vm3, %v400_v48  ;;  %v2139_v48 = vpack.i.bf16 %v697_v46, %v696_v45  ;;  %v1805_v45 = vld [vmem:[#allocation3 + $0xb8] ss:$0 sm:$0xff] }
 0x3fa   :  { %1944 = vmatprep.mubr.msk.f32.mxu0 %vm2251_vm0, %v2252_v8 }
 0x4c7   :  { %v303_v49 = vpop.f32.mrb[2].mxu1 }
 0x4c8   :  { %v307_v50 = vmul.f32 0.25, %v303_v49  ;;  %v1920_v51 = vpop.f32.mrb[3].mxu1 }
 0x4ca   :  { %v309_v52 = vsel %vm308_vm4, %v307_v50, -inf }
 0x4cb   :  { %310 = vmax.xlane.f32.xlu1 %v309_v52 }
 0x4cc   :  { %v473_v53 = vpop.f32.mrb[2].mxu0 }
 0x4cd   :  { %v477_v54 = vmul.f32 0.25, %v473_v53  ;;  %v1930_v55 = vpop.f32.mrb[3].mxu0  ;;  %v1793_v53 = vld [vmem:[#allocation3 + $0x72] ss:$0 sm:$0xff] }
 0x4ce   :  { %v1794_v55 = vld [vmem:[#allocation3 + $0x73] ss:$0 sm:$0xff] }
 0x4cf   :  { %v478_v56 = vsel %vm308_vm4, %v477_v54, -inf }
 0x4d0   :  { %479 = vmax.xlane.f32.xlu0 %v478_v56 }
 0x4dc   :  { %491 = vrot.lane.b32.xlu1 %v226_v44, %s2256_s29 }
 0x558   :  { %v311_v57 = vpop.xlane.xlu1 %310 }
 0x559   :  { %v312_v58 = vsub.f32 %v307_v50, %v311_v57 }
 0x55b   :  { %v313_v59 = vmul.f32 1.442695, %v312_v58 }
 0x55c   :  { %v492_v10 = vpop.permute.xlu1 %491 }
 0x55d   :  { %2166 = vpow2.f32 %v313_v59  ;;  %v480_v60 = vpop.xlane.xlu0 %479 }
 0x55e   :  { %v481_v61 = vsub.f32 %v477_v54, %v480_v60 }
 0x560   :  { %v482_v62 = vmul.f32 1.442695, %v481_v61 }
 0x562   :  { %2168 = vpow2.f32 %v482_v62 }
 0x567   :  { %v2167_v63 = vpop.eup %2166 }
 0x568   :  { %v315_v0 = vsel %vm308_vm4, %v2167_v63, 0.0 }
 0x569   :  { %316 = vadd.xlane.f32.xlu0 %v315_v0 }
 0x56c   :  { %v2169_v2 = vpop.eup %2168 }
 0x56d   :  { %v484_v3 = vsel %vm308_vm4, %v2169_v2, 0.0 }
 0x56e   :  { %485 = vadd.xlane.f32.xlu0 %v484_v3 }
 0x584   :  { %322 = vrot.lane.b32.xlu0 %v226_v44, %s2257_s30  ;;  %v2063_v44 = vpack.c.bf16 %v695_v43, %v694_v42 }
 0x588   :  { %2125 = vrot.lane.b32.xlu0 %v2124_v29, %s2258_s8 }
 0x5f6   :  { %v317_v4 = vpop.xlane.xlu0 %316 }
 0x5f7   :  { %2170 = vrcp.f32 %v317_v4  ;;  %v1795_v4 = vld [vmem:[#allocation3 + $0x74] ss:$0 sm:$0xff] }
 0x5fb   :  { %v486_v5 = vpop.xlane.xlu0 %485 }
 0x5fc   :  { %2172 = vrcp.f32 %v486_v5 }
 0x5ff   :  { %v323_v6 = vpop.permute.xlu0 %322 }
 0x600   :  { %1922 = vmatpush3.msra.mxu1 %v323_v6 }
 0x601   :  { %v2171_v7 = vpop.eup %2170  ;;  %1931 = vmatprep.subr.mxu1 %v2252_v8 }
 0x602   :  { %v319_v9 = vmul.f32 %v2171_v7, %v2167_v63 }
 0x603   :  { %v2126_v15 = vpop.permute.xlu0 %2125 }
 0x604   :  { %v320_v11 = vsel %vm308_vm4, %v319_v9, 0.0  ;;  %1924 = vmatmul.mubr.msk.f32.vlgmr.msra.gmra.mrb[4].mxu1 %vm308_vm4, %v319_v9  ;;  %v2128_v16 = vunpack.i.h.bf16 %v2126_v15  ;;  %v2127_v17 = vunpack.i.l.bf16 %v2126_v15 }
 0x605   :  { %321 = vst [vmem:[%s2513_s3] sm:$0xff] %v320_v11  ;;  %1932 = vmatpush3.msra.mxu1 %v492_v10  ;;  %1933 = vmatprep.mubr.msk.f32.mxu1 %vm2251_vm0, %v2252_v8 }
 0x606   :  { %v2173_v12 = vpop.eup %2172  ;;  %2062 = vmatprep.subr.bf16.mxu1 %v2250_v1  ;;  %v2057_v18 = vpack.c.bf16 %v2128_v16, %v2127_v17 }
 0x607   :  { %v488_v13 = vmul.f32 %v2173_v12, %v2169_v2 }
 0x608   :  { %2058 = vmatpush3.bf16.msra.mxu0 %v2057_v18  ;;  %v1797_v18 = vld [vmem:[#allocation3 + $0x75] ss:$0 sm:$0xff] }
 0x609   :  { %v489_v14 = vsel %vm308_vm4, %v488_v13, 0.0  ;;  %1934 = vmatmul.mubr.msk.f32.vlgmr.msra.gmra.mrb[6].mxu1 %vm308_vm4, %v488_v13  ;;  %2059 = vmatprep.subr.bf16.mxu0 %v2250_v1 }
 0x60a   :  { %490 = vst [vmem:[%s2513_s3 + $0x8] sm:$0xff] %v489_v14  ;;  %1955 = vmatprep.mubr.msk.f32.mxu1 %vm2251_vm0, %v2252_v8  ;;  %2064 = vmatpush3.bf16.msra.mxu1 %v2063_v44 }
 0x60b   :  { %2065 = vmatprep.subr.bf16.mxu1 %v2250_v1 }
 0x60e   :  { %2067 = vmatpush3.bf16.msra.mxu1 %v2066_v47 }
 0x60f   :  { %2076 = vmatprep.subr.bf16.mxu1 %v2250_v1 }
 0x6d7   :  { %v394_v19 = vpop.f32.mrb[4].mxu1 }
 0x6d8   :  { %398 = vst.msk [vmem:[#allocation2] sm:$0xff] %vm232_vm3, %v394_v19  ;;  %v1925_v20 = vpop.f32.mrb[5].mxu1 }
 0x6dc   :  { %v563_v21 = vpop.f32.mrb[6].mxu1 }
 0x6dd   :  { %568 = vrot.lane.b32.xlu0 %v563_v21, %s2259_s9  ;;  %v1935_v22 = vpop.f32.mrb[7].mxu1 }
 0x6e1   :  { %2130 = vrot.lane.b32.xlu0 %v2129_v23, %s2258_s8 }
 0x74f   :  { %v569_v24 = vpop.permute.xlu0 %568 }
 0x750   :  { %572 = vst.msk [vmem:[#allocation2] sm:$0xff] %vm571_vm5, %v569_v24 }
 0x753   :  { %v2131_v25 = vpop.permute.xlu0 %2130 }
 0x754   :  { %v2133_v26 = vunpack.i.h.bf16 %v2131_v25  ;;  %v2132_v27 = vunpack.i.l.bf16 %v2131_v25 }
 0x756   :  { %v2060_v29 = vpack.c.bf16 %v2133_v26, %v2132_v27 }
 0x757   :  { %v573_v30 = vld [vmem:[#allocation2] sm:$0xff] }
 0x758   :  { %2061 = vmatpush3.bf16.msra.mxu0 %v2060_v29 }
 0x759   :  { %2068 = vmatprep.subr.bf16.mxu0 %v2250_v1 }
 0x75b   :  { %1945 = vmatmul.mubr.msk.f32.vlgmr.msra.gmra.mrb[4].mxu0 %vm41_vm1, %v573_v30  ;;  %v2409_v30 = vld [vmem:[#allocation3 + $0x78] sm:$0xff] }
 0x75c   :  { %1966 = vmatprep.mubr.msk.f32.mxu0 %vm2251_vm0, %v2252_v8 }
 0x82e   :  { %v664_v31 = vpop.f32.mrb[4].mxu0 }
 0x82f   :  { %v665_v32 = vadd.f32 %v1791_v28, %v664_v31  ;;  %v1946_v33 = vpop.f32.mrb[5].mxu0  ;;  %v2411_v28 = vld [vmem:[#allocation3 + $0x80] sm:$0xff] }
 0x830   :  { %v2077_v31 = vpack.c.bf16 %v2411_v28, %v2409_v30  ;;  %v2417_v33 = vld [vmem:[#allocation3 + $0x90] sm:$0xff] }
 0x831   :  { %v668_v34 = vadd.f32 %v665_v32, %v2326_v41  ;;  %v2134_v41 = vpack.i.bf16 %v695_v43, %v694_v42  ;;  %v2415_v32 = vld [vmem:[#allocation3 + $0x88] sm:$0xff]  ;;  %v1804_v42 = vld [vmem:[#allocation3 + $0x77] ss:$0 sm:$0xff] }
 0x833   :  { %v671_v35 = vsel %vm41_vm1, %v668_v34, 0.0 }
 0x834   :  { %672 = vadd.xlane.f32.xlu0 %v671_v35 }
 0x84a   :  { %2135 = vrot.lane.b32.xlu0 %v2134_v41, %s2257_s30 }
 0x8c1   :  { %v673_v36 = vpop.xlane.xlu0 %672 }
 0x8c2   :  { %v674_v37 = vmul.f32 0.03125, %v673_v36 }
 0x8c4   :  { %v675_v38 = vsub.f32 %v668_v34, %v674_v37  ;;  %v2080_v34 = vpack.c.bf16 %v2417_v33, %v2415_v32 }
 0x8c5   :  { %v2136_v58 = vpop.permute.xlu0 %2135 }
 0x8c6   :  { %v676_v39 = vmul.f32 %v675_v38, %v675_v38  ;;  %v2138_v59 = vunpack.i.h.bf16 %v2136_v58  ;;  %v2137_v60 = vunpack.i.l.bf16 %v2136_v58 }
 0x8c8   :  { %v677_v40 = vsel %vm41_vm1, %v676_v39, 0.0  ;;  %v2069_v61 = vpack.c.bf16 %v2138_v59, %v2137_v60  ;;  %v1803_v39 = vld [vmem:[#allocation3 + $0x76] ss:$0 sm:$0xff] }
 0x8c9   :  { %678 = vadd.xlane.f32.xlu1 %v677_v40 }
 0x8ca   :  { %2071 = vmatpush3.bf16.xpose.msk.msra.mxu0 %vm2394_vm7, %v2069_v61 }
 0x8cb   :  { %2072 = vmatprep.subr.bf16.mxu0 %v2250_v1 }
 0x8da   :  { %2140 = vrot.lane.b32.xlu1 %v2139_v48, %s2257_s30 }
 0x956   :  { %v679_v49 = vpop.xlane.xlu1 %678 }
 0x957   :  { %v680_v50 = vmul.f32 0.03125, %v679_v49 }
 0x959   :  { %v681_v51 = vadd.f32 1e-12, %v680_v50 }
 0x95a   :  { %v2141_v63 = vpop.permute.xlu1 %2140 }
 0x95b   :  { %2174 = vrsqrt.f32 %v681_v51  ;;  %v2143_v0 = vunpack.i.h.bf16 %v2141_v63  ;;  %v2142_v2 = vunpack.i.l.bf16 %v2141_v63 }
 0x95d   :  { %v2073_v3 = vpack.c.bf16 %v2143_v0, %v2142_v2 }
 0x95f   :  { %2075 = vmatpush3.bf16.xpose.msk.msra.mxu0 %vm2394_vm7, %v2073_v3 }
 0x960   :  { %1990 = vmatprep.subr.mxu0 %v2252_v8 }
 0x965   :  { %v2175_v52 = vpop.eup %2174 }
 0x966   :  { %v683_v54 = vmul.f32 %v2175_v52, %v675_v38 }
 0x968   :  { %v688_v56 = vmul.f32 %v1793_v53, %v683_v54 }
 0x96a   :  { %v693_v57 = vadd.f32 %v1794_v55, %v688_v56 }
 0x96c   :  { %1956 = vmatmul.mubr.msk.f32.vlgmr.msra.gmra.mrb[8].mxu1 %vm41_vm1, %v693_v57 }
 0x96d   :  { %1977 = vmatprep.mubr.msk.f32.mxu1 %vm2251_vm0, %v2252_v8  ;;  %2078 = vmatpush3.bf16.msra.mxu1 %v2077_v31 }
 0x96e   :  { %2079 = vmatprep.subr.bf16.mxu1 %v2250_v1 }
 0x971   :  { %2081 = vmatpush3.bf16.msra.mxu1 %v2080_v34  ;;  %v1813_v34 = vld [vmem:[#allocation3 + $0xb9] ss:$0 sm:$0xff] }
 0x972   :  { %1980 = vmatprep.subr.mxu1 %v2252_v8 }
 0xa3f   :  { %v772_v5 = vpop.f32.mrb[8].mxu1 }
 0xa40   :  { %v773_v6 = vadd.f32 %v1795_v4, %v772_v5  ;;  %v1957_v7 = vpop.f32.mrb[9].mxu1 }
 0xa42   :  { %v776_v9 = vmul.f32 %v773_v6, %v773_v6 }
 0xa44   :  { %v777_v10 = vmul.f32 %v776_v9, %v773_v6 }
 0xa46   :  { %v778_v11 = vmul.f32 0.044715, %v777_v10 }
 0xa48   :  { %v779_v12 = vadd.f32 %v778_v11, %v773_v6 }
 0xa4a   :  { %v780_v13 = vmul.f32 0.7978846, %v779_v12 }
 0xa4c   :  { %2176 = vtanh.f32 %v780_v13 }
 0xa56   :  { %v2177_v14 = vpop.eup %2176 }
 0xa57   :  { %v782_v15 = vadd.f32 1.0, %v2177_v14 }
 0xa59   :  { %v783_v16 = vmul.f32 0.5, %v782_v15 }
 0xa5b   :  { %v784_v17 = vmul.f32 %v783_v16, %v773_v6 }
 0xa5d   :  { %1967 = vmatmul.mubr.msk.f32.vlgmr.msra.gmra.mrb[6].mxu0 %vm802_vm6, %v784_v17 }
 0xa5e   :  { %1992 = vmatprep.mubr.msk.f32.mxu0 %vm2251_vm0, %v2252_v8 }
 0xb30   :  { %v880_v19 = vpop.f32.mrb[6].mxu0 }
 0xb31   :  { %v881_v20 = vadd.f32 %v1797_v18, %v880_v19  ;;  %v1968_v21 = vpop.f32.mrb[7].mxu0  ;;  %v2144_v18 = vpack.i.bf16 %v2411_v28, %v2409_v30  ;;  %v2149_v19 = vpack.i.bf16 %v2417_v33, %v2415_v32 }
 0xb33   :  { %v884_v22 = vadd.f32 %v881_v20, %v693_v57 }
 0xb35   :  { %v887_v23 = vsel %vm41_vm1, %v884_v22, 0.0 }
 0xb36   :  { %888 = vadd.xlane.f32.xlu0 %v887_v23 }
 0xbc3   :  { %v889_v24 = vpop.xlane.xlu0 %888 }
 0xbc4   :  { %v890_v25 = vmul.f32 0.03125, %v889_v24 }
 0xbc6   :  { %v891_v26 = vsub.f32 %v884_v22, %v890_v25 }
 0xbc8   :  { %v892_v27 = vmul.f32 %v891_v26, %v891_v26 }
 0xbca   :  { %v893_v29 = vsel %vm41_vm1, %v892_v27, 0.0 }
 0xbcb   :  { %894 = vadd.xlane.f32.xlu1 %v893_v29 }
 0xc58   :  { %v895_v35 = vpop.xlane.xlu1 %894 }
 0xc59   :  { %v896_v36 = vmul.f32 0.03125, %v895_v35 }
 0xc5b   :  { %v897_v37 = vadd.f32 1e-12, %v896_v36 }
 0xc5d   :  { %2178 = vrsqrt.f32 %v897_v37 }
 0xc67   :  { %v2179_v38 = vpop.eup %2178 }
 0xc68   :  { %v899_v40 = vmul.f32 %v2179_v38, %v891_v26 }
 0xc6a   :  { %v904_v43 = vmul.f32 %v1803_v39, %v899_v40 }
 0xc6c   :  { %v2423_v44 = vadd.f32 %v1804_v42, %v904_v43 }
 0xc6e   :  { %1978 = vmatmul.mubr.msk.f32.vlgmr.msra.gmra.mrb[10].mxu1 %vm41_vm1, %v2423_v44 }
 0xc6f   :  { %1982 = vmatprep.mubr.msk.f32.mxu1 %vm2251_vm0, %v2252_v8 }
 0xd41   :  { %v988_v46 = vpop.f32.mrb[10].mxu1 }
 0xd42   :  { %v989_v47 = vadd.f32 %v1805_v45, %v988_v46  ;;  %v1979_v41 = vpop.f32.mrb[11].mxu1 }
 0xd43   :  { %v1455_v41 = vld [vmem:[#allocation3 + $0xa0] sm:$0xff] }
 0xd44   :  { %1162 = vrot.lane.b32.xlu1 %v989_v47, %s2254_s1  ;;  %993 = vrot.lane.b32.xlu0 %v989_v47, %s2253_s0 }
 0xd48   :  { %1160 = vrot.lane.b32.xlu0 %v989_v47, %s2255_s28 }
 0xdb6   :  { %v1163_v48 = vpop.permute.xlu1 %1162  ;;  %v994_v49 = vpop.permute.xlu0 %993 }
 0xdb7   :  { %1981 = vmatpush3.xpose.msk.msra.mxu1 %vm232_vm3, %v994_v49  ;;  %1991 = vmatpush3.xpose.msk.msra.mxu0 %vm232_vm3, %v1163_v48  ;;  %v1456_v49 = vld [vmem:[#allocation3 + $0xa8] sm:$0xff] }
 0xdb8   :  { %1985 = vmatprep.subr.mxu1 %v2252_v8  ;;  %2082 = vmatprep.subr.bf16.mxu0 %v2250_v1 }
 0xdba   :  { %1983 = vmatmul.mubr.msk.f32.vlgmr.msra.gmra.mrb[12].mxu1 %vm232_vm3, %v989_v47  ;;  %v1161_v50 = vpop.permute.xlu0 %1160 }
 0xdbb   :  { %1993 = vmatmul.mubr.msk.f32.vlgmr.msra.gmra.mrb[8].mxu0 %vm232_vm3, %v1161_v50  ;;  %1987 = vmatprep.mubr.msk.f32.mxu1 %vm2251_vm0, %v2252_v8  ;;  %v1457_v50 = vld [vmem:[#allocation3 + $0xb0] sm:$0xff] }
 0xdbc   :  { %2008 = vmatprep.mubr.msk.f32.mxu0 %vm2251_vm0, %v2252_v8 }
 0xe8d   :  { %v1065_v51 = vpop.f32.mrb[12].mxu1 }
 0xe8e   :  { %v1069_v52 = vmul.f32 0.25, %v1065_v51  ;;  %v1984_v53 = vpop.f32.mrb[13].mxu1  ;;  %v1234_v54 = vpop.f32.mrb[8].mxu0  ;;  %v2092_v51 = vpack.c.bf16 %v1457_v50, %v1456_v49 }
 0xe8f   :  { %v1238_v55 = vmul.f32 0.25, %v1234_v54  ;;  %v1994_v56 = vpop.f32.mrb[9].mxu0 }
 0xe90   :  { %v1070_v57 = vsel %vm308_vm4, %v1069_v52, -inf }
 0xe91   :  { %1071 = vmax.xlane.f32.xlu1 %v1070_v57  ;;  %v1239_v58 = vsel %vm308_vm4, %v1238_v55, -inf  ;;  %v1815_v57 = vld [vmem:[#allocation3 + $0xba] ss:$0 sm:$0xff] }
 0xe92   :  { %1240 = vmax.xlane.f32.xlu0 %v1239_v58 }
 0xf1e   :  { %v1072_v59 = vpop.xlane.xlu1 %1071 }
 0xf1f   :  { %v1073_v60 = vsub.f32 %v1069_v52, %v1072_v59  ;;  %v1241_v61 = vpop.xlane.xlu0 %1240  ;;  %v2159_v52 = vpack.i.bf16 %v1457_v50, %v1456_v49  ;;  %v1816_v59 = vld [vmem:[#allocation3 + $0xbb] ss:$0 sm:$0xff] }
 0xf20   :  { %v1242_v63 = vsub.f32 %v1238_v55, %v1241_v61 }
 0xf21   :  { %v1074_v0 = vmul.f32 1.442695, %v1073_v60 }
 0xf22   :  { %v1243_v2 = vmul.f32 1.442695, %v1242_v63 }
 0xf23   :  { %2180 = vpow2.f32 %v1074_v0 }
 0xf24   :  { %2182 = vpow2.f32 %v1243_v2 }
 0xf2d   :  { %v2181_v3 = vpop.eup %2180 }
 0xf2e   :  { %v2183_v4 = vpop.eup %2182  ;;  %v1076_v5 = vsel %vm308_vm4, %v2181_v3, 0.0 }
 0xf2f   :  { %1077 = vadd.xlane.f32.xlu0 %v1076_v5  ;;  %v1245_v6 = vsel %vm308_vm4, %v2183_v4, 0.0 }
 0xf30   :  { %1246 = vadd.xlane.f32.xlu1 %v1245_v6 }
 0xf41   :  { %1252 = vrot.lane.b32.xlu1 %v989_v47, %s2256_s29 }
 0xf45   :  { %1083 = vrot.lane.b32.xlu0 %v989_v47, %s2257_s30  ;;  %2145 = vrot.lane.b32.xlu1 %v2144_v18, %s2258_s8  ;;  %v1454_v47 = vld [vmem:[#allocation3 + $0x98] sm:$0xff] }
 0xf46   :  { %v2089_v48 = vpack.c.bf16 %v1455_v41, %v1454_v47 }
 0xf49   :  { %2150 = vrot.lane.b32.xlu1 %v2149_v19, %s2258_s8 }
 0xfbc   :  { %v1078_v7 = vpop.xlane.xlu0 %1077 }
 0xfbd   :  { %2184 = vrcp.f32 %v1078_v7  ;;  %v1247_v9 = vpop.xlane.xlu1 %1246 }
 0xfbe   :  { %2186 = vrcp.f32 %v1247_v9  ;;  %v1817_v9 = vld [vmem:[#allocation3 + $0xbc] ss:$0 sm:$0xff] }
 0xfc0   :  { %v1084_v10 = vpop.permute.xlu0 %1083 }
 0xfc1   :  { %1986 = vmatpush3.msra.mxu1 %v1084_v10  ;;  %v1253_v16 = vpop.permute.xlu1 %1252 }
 0xfc2   :  { %1995 = vmatprep.subr.mxu1 %v2252_v8 }
 0xfc5   :  { %v2146_v20 = vpop.permute.xlu1 %2145 }
 0xfc6   :  { %v2148_v21 = vunpack.i.h.bf16 %v2146_v20  ;;  %v2147_v22 = vunpack.i.l.bf16 %v2146_v20 }
 0xfc7   :  { %v2185_v11 = vpop.eup %2184 }
 0xfc8   :  { %v2187_v12 = vpop.eup %2186  ;;  %v1080_v13 = vmul.f32 %v2185_v11, %v2181_v3  ;;  %v2083_v23 = vpack.c.bf16 %v2148_v21, %v2147_v22  ;;  %v1819_v21 = vld [vmem:[#allocation3 + $0xbd] ss:$0 sm:$0xff] }
 0xfc9   :  { %v1249_v14 = vmul.f32 %v2187_v12, %v2183_v4  ;;  %v2151_v24 = vpop.permute.xlu1 %2150 }
 0xfca   :  { %v1081_v15 = vsel %vm308_vm4, %v1080_v13, 0.0  ;;  %1988 = vmatmul.mubr.msk.f32.vlgmr.msra.gmra.mrb[14].mxu1 %vm308_vm4, %v1080_v13  ;;  %v2153_v25 = vunpack.i.h.bf16 %v2151_v24  ;;  %v2152_v26 = vunpack.i.l.bf16 %v2151_v24  ;;  %2084 = vmatpush3.bf16.msra.mxu0 %v2083_v23 }
 0xfcb   :  { %1082 = vst [vmem:[%s2513_s3 + $0x10] sm:$0xff] %v1081_v15  ;;  %v1250_v17 = vsel %vm308_vm4, %v1249_v14, 0.0  ;;  %1996 = vmatpush3.msra.mxu1 %v1253_v16  ;;  %1997 = vmatprep.mubr.msk.f32.mxu1 %vm2251_vm0, %v2252_v8 }
 0xfcc   :  { %1251 = vst [vmem:[%s2513_s3 + $0x18] sm:$0xff] %v1250_v17  ;;  %2088 = vmatprep.subr.bf16.mxu1 %v2250_v1  ;;  %2085 = vmatprep.subr.bf16.mxu0 %v2250_v1  ;;  %v2086_v27 = vpack.c.bf16 %v2153_v25, %v2152_v26  ;;  %s2260_s3 = smov [#allocation6]  }
 0xfcd   :  { %s1766_s14 = sshll.u32 %s2260_s3, 4  ;;  %s1767_s14 = int_to_ptr.vmem [resolvable:$true] %s1766_s14 }
 0xfce   :  { %1998 = vmatmul.mubr.msk.f32.vlgmr.msra.gmra.mrb[16].mxu1 %vm308_vm4, %v1249_v14  ;;  %2087 = vmatpush3.bf16.msra.mxu0 %v2086_v27  ;;  %s2220_s15 = scalar_lea.vmem %s1767_s14, 16  ;;  %s2224_s16 = scalar_lea.vmem %s1767_s14, 32 }
 0xfcf   :  { %2019 = vmatprep.mubr.msk.f32.mxu1 %vm2251_vm0, %v2252_v8  ;;  %2094 = vmatprep.subr.bf16.mxu0 %v2250_v1  ;;  %p2221_p8 = scmp.ne.s32.totalorder %s1767_s14, %s2220_s15  ;;  %p2225_p9 = scmp.lt.s32.totalorder %s1767_s14, %s1767_s14 }
 0xfd0   :  { %2090 = vmatpush3.bf16.msra.mxu1 %v2089_v48  ;;  %p2226_p10 = scmp.lt.s32.totalorder %s2224_s16, %s2220_s15 }
 0xfd1   :  { %2091 = vmatprep.subr.bf16.mxu1 %v2250_v1 }
 0xfd2   :  { %p2227_p11 = por %p2226_p10, %p2225_p9 }
 0xfd4   :  { %2093 = vmatpush3.bf16.msra.mxu1 %v2092_v51  ;;  %p2228_p12 = pnand %p2227_p11, %p2221_p8 }
 0xfd5   :  { %2102 = vmatprep.subr.bf16.mxu1 %v2250_v1 }
0x109d   :  { %v1155_v29 = vpop.f32.mrb[14].mxu1 }
0x109e   :  { %1159 = vst.msk [vmem:[#allocation2] sm:$0xff] %vm232_vm3, %v1155_v29  ;;  %v1989_v30 = vpop.f32.mrb[15].mxu1 }
0x10a1   :  { %v1324_v28 = vpop.f32.mrb[16].mxu1 }
0x10a2   :  { %1329 = vrot.lane.b32.xlu0 %v1324_v28, %s2259_s9  ;;  %v1999_v31 = vpop.f32.mrb[17].mxu1 }
0x10a3   :  { %v1669_v31 = vld [vmem:[#allocation3 + $0xc0] sm:$0xff] }
0x1114   :  { %v1330_v32 = vpop.permute.xlu0 %1329 }
0x1115   :  { %1332 = vst.msk [vmem:[#allocation2] sm:$0xff] %vm571_vm5, %v1330_v32  ;;  %v1670_v32 = vld [vmem:[#allocation3 + $0xc8] sm:$0xff] }
0x111c   :  { %v1333_v33 = vld [vmem:[#allocation2] sm:$0xff] }
0x111d   :  { %2009 = vmatmul.mubr.msk.f32.vlgmr.msra.gmra.mrb[10].mxu0 %vm41_vm1, %v1333_v33  ;;  %v2103_v33 = vpack.c.bf16 %v1670_v32, %v1669_v31 }
0x111e   :  { %2030 = vmatprep.mubr.msk.f32.mxu0 %vm2251_vm0, %v2252_v8 }
0x11f0   :  { %v1424_v35 = vpop.f32.mrb[10].mxu0 }
0x11f1   :  { %v1425_v36 = vadd.f32 %v1813_v34, %v1424_v35  ;;  %v2010_v37 = vpop.f32.mrb[11].mxu0  ;;  %v1671_v34 = vld [vmem:[#allocation3 + $0xd0] sm:$0xff]  ;;  %v1672_v35 = vld [vmem:[#allocation3 + $0xd8] sm:$0xff] }
0x11f3   :  { %v1428_v38 = vadd.f32 %v1425_v36, %v2423_v44  ;;  %v2154_v44 = vpack.i.bf16 %v1455_v41, %v1454_v47  ;;  %v2106_v36 = vpack.c.bf16 %v1672_v35, %v1671_v34  ;;  %v1673_v41 = vld [vmem:[#allocation3 + $0xe0] sm:$0x1] }
0x11f5   :  { %v1431_v39 = vsel %vm41_vm1, %v1428_v38, 0.0 }
0x11f6   :  { %1432 = vadd.xlane.f32.xlu0 %v1431_v39 }
0x120c   :  { %2155 = vrot.lane.b32.xlu0 %v2154_v44, %s2257_s30 }
0x1283   :  { %v1433_v40 = vpop.xlane.xlu0 %1432 }
0x1284   :  { %v1434_v42 = vmul.f32 0.03125, %v1433_v40 }
0x1286   :  { %v1435_v43 = vsub.f32 %v1428_v38, %v1434_v42  ;;  %v1825_v42 = vld [vmem:[#allocation3 + $0xbe] ss:$0 sm:$0xff] }
0x1287   :  { %v2156_v63 = vpop.permute.xlu0 %2155 }
0x1288   :  { %v1436_v45 = vmul.f32 %v1435_v43, %v1435_v43  ;;  %v2158_v0 = vunpack.i.h.bf16 %v2156_v63  ;;  %v2157_v2 = vunpack.i.l.bf16 %v2156_v63 }
0x128a   :  { %v1437_v46 = vsel %vm41_vm1, %v1436_v45, 0.0  ;;  %v2095_v3 = vpack.c.bf16 %v2158_v0, %v2157_v2  ;;  %v1826_v45 = vld [vmem:[#allocation3 + $0xbf] ss:$0 sm:$0xff] }
0x128b   :  { %1438 = vadd.xlane.f32.xlu1 %v1437_v46 }
0x128c   :  { %2097 = vmatpush3.bf16.xpose.msk.msra.mxu0 %vm2394_vm7, %v2095_v3 }
0x128d   :  { %2098 = vmatprep.subr.bf16.mxu0 %v2250_v1 }
0x129c   :  { %2160 = vrot.lane.b32.xlu1 %v2159_v52, %s2257_s30 }
0x1318   :  { %v1439_v53 = vpop.xlane.xlu1 %1438 }
0x1319   :  { %v1440_v54 = vmul.f32 0.03125, %v1439_v53 }
0x131b   :  { %v1441_v55 = vadd.f32 1e-12, %v1440_v54 }
0x131c   :  { %v2161_v4 = vpop.permute.xlu1 %2160 }
0x131d   :  { %2188 = vrsqrt.f32 %v1441_v55  ;;  %v2163_v5 = vunpack.i.h.bf16 %v2161_v4  ;;  %v2162_v6 = vunpack.i.l.bf16 %v2161_v4 }
0x131f   :  { %v2099_v7 = vpack.c.bf16 %v2163_v5, %v2162_v6 }
0x1321   :  { %2101 = vmatpush3.bf16.xpose.msk.msra.mxu0 %vm2394_vm7, %v2099_v7 }
0x1327   :  { %v2189_v56 = vpop.eup %2188 }
0x1328   :  { %v1443_v58 = vmul.f32 %v2189_v56, %v1435_v43 }
0x132a   :  { %v1448_v60 = vmul.f32 %v1815_v57, %v1443_v58 }
0x132c   :  { %v1453_v61 = vadd.f32 %v1816_v59, %v1448_v60 }
0x132e   :  { %2020 = vmatmul.mubr.msk.f32.vlgmr.msra.gmra.mrb[18].mxu1 %vm41_vm1, %v1453_v61 }
0x132f   :  { %2041 = vmatprep.mubr.msk.f32.mxu1 %vm2251_vm0, %v2252_v8  ;;  %2104 = vmatpush3.bf16.msra.mxu1 %v2103_v33 }
0x1330   :  { %2105 = vmatprep.subr.bf16.mxu1 %v2250_v1 }
0x1333   :  { %2107 = vmatpush3.bf16.msra.mxu1 %v2106_v36 }
0x1401   :  { %v1532_v10 = vpop.f32.mrb[18].mxu1 }
0x1402   :  { %v1533_v11 = vadd.f32 %v1817_v9, %v1532_v10  ;;  %v2021_v8 = vpop.f32.mrb[19].mxu1 }
0x1404   :  { %v1536_v12 = vmul.f32 %v1533_v11, %v1533_v11 }
0x1406   :  { %v1537_v13 = vmul.f32 %v1536_v12, %v1533_v11 }
0x1408   :  { %v1538_v14 = vmul.f32 0.044715, %v1537_v13 }
0x140a   :  { %v1539_v15 = vadd.f32 %v1538_v14, %v1533_v11 }
0x140c   :  { %v1540_v16 = vmul.f32 0.7978846, %v1539_v15 }
0x140e   :  { %2190 = vtanh.f32 %v1540_v16 }
0x1418   :  { %v2191_v17 = vpop.eup %2190 }
0x1419   :  { %v1542_v18 = vadd.f32 1.0, %v2191_v17 }
0x141b   :  { %v1543_v19 = vmul.f32 0.5, %v1542_v18 }
0x141d   :  { %v1544_v20 = vmul.f32 %v1543_v19, %v1533_v11 }
0x141f   :  { %2031 = vmatmul.mubr.msk.f32.vlgmr.msra.gmra.mrb[12].mxu0 %vm802_vm6, %v1544_v20 }
0x14f2   :  { %v1639_v22 = vpop.f32.mrb[12].mxu0 }
0x14f3   :  { %v1640_v62 = vadd.f32 %v1819_v21, %v1639_v22  ;;  %v2032_v23 = vpop.f32.mrb[13].mxu0 }
0x14f5   :  { %v1643_v24 = vadd.f32 %v1640_v62, %v1453_v61 }
0x14f7   :  { %v1646_v25 = vsel %vm41_vm1, %v1643_v24, 0.0 }
0x14f8   :  { %1647 = vadd.xlane.f32.xlu0 %v1646_v25 }
0x1585   :  { %v1648_v26 = vpop.xlane.xlu0 %1647 }
0x1586   :  { %v1649_v27 = vmul.f32 0.03125, %v1648_v26 }
0x1588   :  { %v1650_v29 = vsub.f32 %v1643_v24, %v1649_v27 }
0x158a   :  { %v1651_v30 = vmul.f32 %v1650_v29, %v1650_v29 }
0x158c   :  { %v1652_v28 = vsel %vm41_vm1, %v1651_v30, 0.0 }
0x158d   :  { %1653 = vadd.xlane.f32.xlu1 %v1652_v28 }
0x161a   :  { %v1654_v37 = vpop.xlane.xlu1 %1653 }
0x161b   :  { %v1655_v38 = vmul.f32 0.03125, %v1654_v37 }
0x161d   :  { %v1656_v39 = vadd.f32 1e-12, %v1655_v38 }
0x161f   :  { %2192 = vrsqrt.f32 %v1656_v39 }
0x1629   :  { %v2193_v40 = vpop.eup %2192 }
0x162a   :  { %v1658_v43 = vmul.f32 %v2193_v40, %v1650_v29 }
0x162c   :  { %v1663_v46 = vmul.f32 %v1825_v42, %v1658_v43 }
0x162e   :  { %v1668_v47 = vadd.f32 %v1826_v45, %v1663_v46 }
0x1630   :  { %2042 = vmatmul.mubr.msk.f32.vlgmr.msra.gmra.mrb[20].mxu1 %vm41_vm1, %v1668_v47 }
0x1703   :  { %v1743_v48 = vpop.f32.mrb[20].mxu1 }
0x1704   :  { %v1744_v1 = vadd.f32 %v1743_v48, %v1673_v41  ;;  %v2043_v49 = vpop.f32.mrb[21].mxu1 }
0x1706   :  { %v1748_v50 = vsel %vm1747_vm8, %v1744_v1, -inf }
0x1707   :  { %1749 = vmax.xlane.f32.xlu0 %v1748_v50 }
0x1794   :  { %v1750_v51 = vpop.xlane.xlu0 %1749 }
0x1795   :  { %v1751_v44 = vsub.f32 %v1744_v1, %v1750_v51 }
0x1797   :  { %v1752_v52 = vmul.f32 1.442695, %v1751_v44 }
0x1799   :  { %2194 = vpow2.f32 %v1752_v52 }
0x17a3   :  { %v2195_v53 = vpop.eup %2194 }
0x17a4   :  { %v1754_v54 = vsel %vm1747_vm8, %v2195_v53, 0.0 }
0x17a5   :  { %1755 = vadd.xlane.f32.xlu0 %v1754_v54 }
0x1832   :  { %v1756_v55 = vpop.xlane.xlu0 %1755 }
0x1833   :  { %2196 = vrcp.f32 %v1756_v55 }
0x183d   :  { %v2197_v56 = vpop.eup %2196 }
0x183e   :  { %v1758_v57 = vmul.f32 %v2197_v56, %v2195_v53 }
0x1840   :  { %1759 = vst [vmem:[#allocation6] sm:$0x1] %v1758_v57 }
0x1841   :  { %2231 = shalt.err (!%p2228_p12)
}
0x1842   :  { %s2232_s19 = scalar_lea.hbm %s2512_s2, 16 }
0x1843   :  { %p2233_p13 = scmp.ne.s32.totalorder %s2512_s2, %s2232_s19  ;;  %p2236_p0 = scmp.lt.u32.totalorder %s2232_s19, %s2512_s2 }
0x1845   :  { %p2238_p1 = pnand %p2236_p0, %p2233_p13 }
0x1847   :  { %2241 = shalt.err (!%p2238_p1)
}
0x1848   :  { %1769 = dma.vmem_to_hbm [thread:$0]  %s1767_s14, 16, %s2512_s2, [#allocation5]  }
0x1849   :  { %2244 = dma.done.wait [#allocation5], 16  }
0x184a   :  { %2245 = vsyncadd [#allocation5], 4294967280 }
0x184b   :  { %1777 = vsyncpa [#allocation4], 1 }
0x184c   :  { %1778 = vsyncpa [#allocation5], 1 }

</bundles_post_ra>
